<compile_context>
chip_gen: v5e
topology: v5e:2x2
jax: 0.10.0
libtpu: 0.0.40
codegen_flags: <defaults>
</compile_context>

<pallas_src>
import math

import jax
import jax.numpy as jnp
from jax.experimental import pallas as pl
from jax.experimental.pallas import tpu as pltpu

# ---------------- model hyper-parameters (small, consistent with module) ----
CAT_DIM = 16          # categorical_dims
NUM_DIM = 8           # numerical_dim
HIDDEN = 32           # hidden_dim
N_HEADS = 4
HEAD_DIM = HIDDEN // N_HEADS
N_LAYERS = 3
NUM_CLASSES = 1
FF_DIM = HIDDEN * 4
LN_EPS = 1e-5

PER_LAYER = 16        # raw param tensors per transformer encoder layer

MAX_TILE_B = 1024     # per-step working set at 1024 rows is only a few MB
MATMUL_DTYPE = jnp.float32   # bf16 = optional headroom on v6e/v7x (see TODO)


# ---------------- shared math (traced inside the Pallas kernel) --------------
def _mm(a, b):
    """MXU matmul with optional reduced-precision operands (f32 accumulate)."""
    return jnp.dot(a.astype(MATMUL_DTYPE), b.astype(MATMUL_DTYPE),
                   preferred_element_type=jnp.float32)


def _layernorm(x, g, b):
    mu = jnp.mean(x, axis=-1, keepdims=True)
    xc = x - mu
    var = jnp.mean(xc * xc, axis=-1, keepdims=True)
    return xc * jax.lax.rsqrt(var + LN_EPS) * g + b


def _segment_matrices():
    """seg[d, h] = 1 if lane d belongs to head h (built host-side, once)."""
    d = jnp.arange(HIDDEN) // HEAD_DIM
    h = jnp.arange(N_HEADS)
    seg = (d[:, None] == h[None, :]).astype(jnp.float32)   # [H, NH]
    return seg, seg.T                                       # and [NH, H]


def _forward(cat, num, p):
    """Fused TabTransformer forward on one batch tile (Refs or arrays)."""
    (wc, bc, wn, bn, qkv_w, qkv_b, ow, ob,
     ff1w, ff1b, ff2w, ff2b, ln, cw1, cb1, cw2, cb2, seg, seg_t) = p

    b = cat.shape[0]
    seg_m = seg[...]       # [H, NH]  (constant VMEM slab, hoisted)
    seg_t_m = seg_t[...]   # [NH, H]

    # token 0 = categorical projection, token 1 = numerical projection,
    # stacked along the sublane axis into one [2B, H] slab.
    x0 = _mm(cat, wc[...]) + bc[...]
    x1 = _mm(num, wn[...]) + bn[...]
    x = jnp.concatenate([x0, x1], axis=0)

    for l in range(N_LAYERS):
        # fused QKV (1/sqrt(head_dim) already folded into the q slice).
        qkv = _mm(x, qkv_w[l]) + qkv_b[l]
        q = qkv[:, 0 * HIDDEN:1 * HIDDEN]
        k = qkv[:, 1 * HIDDEN:2 * HIDDEN]
        v = qkv[:, 2 * HIDDEN:3 * HIDDEN]

        # "other token" views: for a 2b-row slab a roll by b is exactly the
        # half-swap -> single XLU rotate instead of slice+concatenate copies.
        kv_sw = pltpu.roll(qkv[:, HIDDEN:], shift=b, axis=0)
        k_sw = kv_sw[:, :HIDDEN]
        v_sw = kv_sw[:, HIDDEN:]

        # softmax over exactly 2 tokens == sigmoid of the per-head score
        # difference; per-head reduce / broadcast via segment matmuls (MXU).
        d = _mm(q * (k - k_sw), seg_m)                     # [2b, NH]
        w = _mm(1.0 / (1.0 + jnp.exp(-d)), seg_t_m)        # [2b, H]
        attn = v_sw + w * (v - v_sw)
        attn = _mm(attn, ow[l]) + ob[l]

        # PyTorch TransformerEncoderLayer default: post-norm, ReLU activation.
        # TODO(synk): dropout (p=0.1) inside the encoder is identity (eval mode).
        ln_l = ln[l]
        x = _layernorm(x + attn, ln_l[0:1], ln_l[1:2])

        h1 = jnp.maximum(_mm(x, ff1w[l]) + ff1b[l], 0.0)
        ff = _mm(h1, ff2w[l]) + ff2b[l]
        x = _layernorm(x + ff, ln_l[2:3], ln_l[3:4])

    pooled = (x[:b] + x[b:]) * 0.5   # mean over the 2-token sequence

    h = jnp.maximum(_mm(pooled, cw1[...]) + cb1[...], 0.0)
    # TODO(synk): classifier Dropout(0.2) is identity in eval mode.
    # num_classes=1: VPU multiply + row reduction instead of an N=1 MXU matmul.
    return jnp.sum(h * cw2[...], axis=-1, keepdims=True) + cb2[...]


# ---------------- Pallas kernel ----------------------------------------------
def tab_transformer_kernel(cat_ref, num_ref, *rest):
    out_ref = rest[-1]
    params = rest[:-1]
    out_ref[...] = _forward(cat_ref[...], num_ref[...], params)


def _pick_tile_b(B):
    """Largest useful batch tile; prefer >=2 grid steps (v7x megacore)."""
    if B > MAX_TILE_B:
        for t in range(MAX_TILE_B, 7, -8):
            if B % t == 0:
                return t
        raise ValueError("batch must be a multiple of 8 to tile")
    if B >= 16 and B % 16 == 0:
        # two (or more) grid steps so both v7x TensorCores get work; on
        # single-TC chips this costs only one extra ~0.35us pipeline step.
        return B // 2
    return B


def tab_transformer(cat, num, packed, *, tile_b=None):
    B = cat.shape[0]
    if tile_b is None:
        tile_b = _pick_tile_b(B)
    assert B % tile_b == 0, "batch must be a multiple of tile_b"
    assert tile_b == B or tile_b % 8 == 0, "multi-tile path needs tile_b % 8 == 0"

    def batch_spec(feat):
        return pl.BlockSpec((tile_b, feat), lambda i: (i, 0))

    def const_spec(a):
        return pl.BlockSpec(a.shape, lambda i, nd=a.ndim: (0,) * nd)

    in_specs = [batch_spec(cat.shape[1]), batch_spec(num.shape[1])]
    in_specs += [const_spec(a) for a in packed]

    out = pl.pallas_call(
        tab_transformer_kernel,
        out_shape=jax.ShapeDtypeStruct((B, NUM_CLASSES), jnp.float32),
        grid_spec=pltpu.PrefetchScalarGridSpec(
            num_scalar_prefetch=0,
            grid=(B // tile_b,),
            in_specs=in_specs,
            # (tile_b, 1) output block -> masked stores, but writeback is only
            # 4 B/row; lane-dense repack not worth it at this size.
            out_specs=pl.BlockSpec((tile_b, NUM_CLASSES), lambda i: (i, 0)),
        ),
        compiler_params=pltpu.CompilerParams(
            dimension_semantics=("parallel",)),
    )(cat, num, *packed)
    return jnp.squeeze(out, axis=-1)   # matches PyTorch .squeeze(), num_classes=1


# ---------------- parameter init (raw, PyTorch-like layout) ------------------
def init_raw_params(key):
    keys = iter(jax.random.split(key, 64))

    def W(shape, scale=0.1):
        return jax.random.normal(next(keys), shape, jnp.float32) * scale

    def Bv(n):
        return jax.random.normal(next(keys), (1, n), jnp.float32) * 0.05

    params = [W((CAT_DIM, HIDDEN)), Bv(HIDDEN),      # categorical_proj
              W((NUM_DIM, HIDDEN)), Bv(HIDDEN)]      # numerical_proj
    for _ in range(N_LAYERS):
        params += [
            W((HIDDEN, HIDDEN)), Bv(HIDDEN),         # W_q, b_q
            W((HIDDEN, HIDDEN)), Bv(HIDDEN),         # W_k, b_k
            W((HIDDEN, HIDDEN)), Bv(HIDDEN),         # W_v, b_v
            W((HIDDEN, HIDDEN)), Bv(HIDDEN),         # attn out_proj
            jnp.ones((1, HIDDEN), jnp.float32),      # ln1 gamma
            jnp.zeros((1, HIDDEN), jnp.float32),     # ln1 beta
            W((HIDDEN, FF_DIM)), Bv(FF_DIM),         # ff linear1
            W((FF_DIM, HIDDEN)), Bv(HIDDEN),         # ff linear2
            jnp.ones((1, HIDDEN), jnp.float32),      # ln2 gamma
            jnp.zeros((1, HIDDEN), jnp.float32),     # ln2 beta
        ]
    params += [W((HIDDEN, HIDDEN)), Bv(HIDDEN),              # classifier linear1
               W((HIDDEN, NUM_CLASSES)), Bv(NUM_CLASSES)]    # classifier linear2
    return params


def pack_params(raw):
    """Pack the 56 raw tensors into 19 slabs; fold attention scale into W_q."""
    wc, bc, wn, bn = raw[0:4]
    idx = 4
    scale = 1.0 / math.sqrt(HEAD_DIM)
    qkv_w, qkv_b, ow, ob = [], [], [], []
    ff1w, ff1b, ff2w, ff2b, ln = [], [], [], [], []
    for _ in range(N_LAYERS):
        (wq, bq, wk, bk, wv, bv, wo, bo,
         g1, be1, w1, b1, w2, b2, g2, be2) = raw[idx:idx + PER_LAYER]
        idx += PER_LAYER
        qkv_w.append(jnp.concatenate([wq * scale, wk, wv], axis=1))   # [H, 3H]
        qkv_b.append(jnp.concatenate([bq * scale, bk, bv], axis=1))   # [1, 3H]
        ow.append(wo); ob.append(bo)
        ff1w.append(w1); ff1b.append(b1)
        ff2w.append(w2); ff2b.append(b2)
        ln.append(jnp.concatenate([g1, be1, g2, be2], axis=0))        # [4, H]
    cw1, cb1, wout, bout = raw[idx:idx + 4]
    seg, seg_t = _segment_matrices()
    return (wc, bc, wn, bn,
            jnp.stack(qkv_w), jnp.stack(qkv_b),
            jnp.stack(ow), jnp.stack(ob),
            jnp.stack(ff1w), jnp.stack(ff1b),
            jnp.stack(ff2w), jnp.stack(ff2b),
            jnp.stack(ln),
            cw1, cb1, wout.T, bout,
            seg, seg_t)


# ---------------- literal (per-head, unfused) pure-JAX reference -------------
def _reference_forward(cat, num, raw):
    wc, bc, wn, bn = raw[0:4]
    idx = 4
    x0 = jnp.dot(cat, wc) + bc
    x1 = jnp.dot(num, wn) + bn
    scale = 1.0 / math.sqrt(HEAD_DIM)
    for _ in range(N_LAYERS):
        (wq, bq, wk, bk, wv, bv, wo, bo,
         g1, be1, w1, b1, w2, b2, g2, be2) = raw[idx:idx + PER_LAYER]
        idx += PER_LAYER
        q0 = jnp.dot(x0, wq) + bq; q1 = jnp.dot(x1, wq) + bq
        k0 = jnp.dot(x0, wk) + bk; k1 = jnp.dot(x1, wk) + bk
        v0 = jnp.dot(x0, wv) + bv; v1 = jnp.dot(x1, wv) + bv
        outs0, outs1 = [], []
        for h in range(N_HEADS):
            sl = slice(h * HEAD_DIM, (h + 1) * HEAD_DIM)
            kh0, kh1 = k0[:, sl], k1[:, sl]
            vh0, vh1 = v0[:, sl], v1[:, sl]

            def one(qh, kh0=kh0, kh1=kh1, vh0=vh0, vh1=vh1):
                s0 = jnp.sum(qh * kh0, axis=-1, keepdims=True) * scale
                s1 = jnp.sum(qh * kh1, axis=-1, keepdims=True) * scale
                m = jnp.maximum(s0, s1)
                e0, e1 = jnp.exp(s0 - m), jnp.exp(s1 - m)
                return (e0 * vh0 + e1 * vh1) / (e0 + e1)

            outs0.append(one(q0[:, sl])); outs1.append(one(q1[:, sl]))
        a0 = jnp.dot(jnp.concatenate(outs0, -1), wo) + bo
        a1 = jnp.dot(jnp.concatenate(outs1, -1), wo) + bo
        x0 = _layernorm(x0 + a0, g1, be1); x1 = _layernorm(x1 + a1, g1, be1)
        f0 = jnp.dot(jnp.maximum(jnp.dot(x0, w1) + b1, 0.0), w2) + b2
        f1 = jnp.dot(jnp.maximum(jnp.dot(x1, w1) + b1, 0.0), w2) + b2
        x0 = _layernorm(x0 + f0, g2, be2); x1 = _layernorm(x1 + f1, g2, be2)
    pooled = (x0 + x1) * 0.5
    cw1, cb1, wout, bout = raw[idx:idx + 4]
    h = jnp.maximum(jnp.dot(pooled, cw1) + cb1, 0.0)
    return jnp.dot(h, wout) + bout


# ---------------- main --------------------------------------------------------
if __name__ == "__main__":
    key = jax.random.PRNGKey(0)
    kc, kn, kp, kc2, kn2 = jax.random.split(key, 5)

    raw_params = init_raw_params(kp)
    packed_params = pack_params(raw_params)

    # 1) small single-tile case (B=8 -> tile_b=8 -> grid=(1,))
    B1 = 8
    cat1 = jax.random.normal(kc, (B1, CAT_DIM), jnp.float32)
    num1 = jax.random.normal(kn, (B1, NUM_DIM), jnp.float32)
    out1 = jax.block_until_ready(jax.jit(tab_transformer)(cat1, num1, packed_params))
    ref1 = jnp.squeeze(_reference_forward(cat1, num1, raw_params), axis=-1)
    assert out1.shape == (B1,), out1.shape
    assert jnp.allclose(out1, ref1, rtol=2e-4, atol=2e-4), (out1, ref1)

    # 2) multi-step grid (B=32 -> tile_b=16 -> grid=(2,)): exercises the tiled
    #    / megacore-parallel path flagged in the review.
    B2 = 32
    cat2 = jax.random.normal(kc2, (B2, CAT_DIM), jnp.float32)
    num2 = jax.random.normal(kn2, (B2, NUM_DIM), jnp.float32)
    out2 = jax.block_until_ready(jax.jit(tab_transformer)(cat2, num2, packed_params))
    ref2 = jnp.squeeze(_reference_forward(cat2, num2, raw_params), axis=-1)
    assert out2.shape == (B2,), out2.shape
    assert jnp.allclose(out2, ref2, rtol=2e-4, atol=2e-4), (out2, ref2)

    print("KERNEL_OK")
</pallas_src>

<mosaic_0001>
module attributes {stable_mosaic.version = 11 : i64} {
  func.func @tab_transformer_kernel(%arg0: i32, %arg1: memref<8x16xf32, #tpu.memory_space<vmem>>, %arg2: memref<8x8xf32, #tpu.memory_space<vmem>>, %arg3: memref<16x32xf32, #tpu.memory_space<vmem>>, %arg4: memref<1x32xf32, #tpu.memory_space<vmem>>, %arg5: memref<8x32xf32, #tpu.memory_space<vmem>>, %arg6: memref<1x32xf32, #tpu.memory_space<vmem>>, %arg7: memref<3x32x96xf32, #tpu.memory_space<vmem>>, %arg8: memref<3x1x96xf32, #tpu.memory_space<vmem>>, %arg9: memref<3x32x32xf32, #tpu.memory_space<vmem>>, %arg10: memref<3x1x32xf32, #tpu.memory_space<vmem>>, %arg11: memref<3x32x128xf32, #tpu.memory_space<vmem>>, %arg12: memref<3x1x128xf32, #tpu.memory_space<vmem>>, %arg13: memref<3x128x32xf32, #tpu.memory_space<vmem>>, %arg14: memref<3x1x32xf32, #tpu.memory_space<vmem>>, %arg15: memref<3x4x32xf32, #tpu.memory_space<vmem>>, %arg16: memref<32x32xf32, #tpu.memory_space<vmem>>, %arg17: memref<1x32xf32, #tpu.memory_space<vmem>>, %arg18: memref<1x32xf32, #tpu.memory_space<vmem>>, %arg19: memref<1x1xf32, #tpu.memory_space<vmem>>, %arg20: memref<32x4xf32, #tpu.memory_space<vmem>>, %arg21: memref<4x32xf32, #tpu.memory_space<vmem>>, %arg22: memref<8x1xf32, #tpu.memory_space<vmem>>) attributes {dimension_semantics = [#tpu.dimension_semantics<parallel>], iteration_bounds = array<i64: 1>, scalar_prefetch = 0 : i64, scratch_operands = 0 : i64, tpu.core_type = #tpu.core_type<tc>, window_params = [{transform_indices = @transform_0, window_bounds = array<i64: 8, 16>}, {transform_indices = @transform_1, window_bounds = array<i64: 8, 8>}, {pipeline_mode = #tpu.pipeline_mode<synchronous>, transform_indices = @transform_2, window_bounds = array<i64: 16, 32>}, {pipeline_mode = #tpu.pipeline_mode<synchronous>, transform_indices = @transform_3, window_bounds = array<i64: 1, 32>}, {pipeline_mode = #tpu.pipeline_mode<synchronous>, transform_indices = @transform_4, window_bounds = array<i64: 8, 32>}, {pipeline_mode = #tpu.pipeline_mode<synchronous>, transform_indices = @transform_5, window_bounds = array<i64: 1, 32>}, {pipeline_mode = #tpu.pipeline_mode<synchronous>, transform_indices = @transform_6, window_bounds = array<i64: 3, 32, 96>}, {pipeline_mode = #tpu.pipeline_mode<synchronous>, transform_indices = @transform_7, window_bounds = array<i64: 3, 1, 96>}, {pipeline_mode = #tpu.pipeline_mode<synchronous>, transform_indices = @transform_8, window_bounds = array<i64: 3, 32, 32>}, {pipeline_mode = #tpu.pipeline_mode<synchronous>, transform_indices = @transform_9, window_bounds = array<i64: 3, 1, 32>}, {pipeline_mode = #tpu.pipeline_mode<synchronous>, transform_indices = @transform_10, window_bounds = array<i64: 3, 32, 128>}, {pipeline_mode = #tpu.pipeline_mode<synchronous>, transform_indices = @transform_11, window_bounds = array<i64: 3, 1, 128>}, {pipeline_mode = #tpu.pipeline_mode<synchronous>, transform_indices = @transform_12, window_bounds = array<i64: 3, 128, 32>}, {pipeline_mode = #tpu.pipeline_mode<synchronous>, transform_indices = @transform_13, window_bounds = array<i64: 3, 1, 32>}, {pipeline_mode = #tpu.pipeline_mode<synchronous>, transform_indices = @transform_14, window_bounds = array<i64: 3, 4, 32>}, {pipeline_mode = #tpu.pipeline_mode<synchronous>, transform_indices = @transform_15, window_bounds = array<i64: 32, 32>}, {pipeline_mode = #tpu.pipeline_mode<synchronous>, transform_indices = @transform_16, window_bounds = array<i64: 1, 32>}, {pipeline_mode = #tpu.pipeline_mode<synchronous>, transform_indices = @transform_17, window_bounds = array<i64: 1, 32>}, {pipeline_mode = #tpu.pipeline_mode<synchronous>, transform_indices = @transform_18, window_bounds = array<i64: 1, 1>}, {pipeline_mode = #tpu.pipeline_mode<synchronous>, transform_indices = @transform_19, window_bounds = array<i64: 32, 4>}, {pipeline_mode = #tpu.pipeline_mode<synchronous>, transform_indices = @transform_20, window_bounds = array<i64: 4, 32>}, {transform_indices = @transform_21, window_bounds = array<i64: 8, 1>}]} {
    %c0 = arith.constant 0 : index
    %c0_0 = arith.constant 0 : index
    %0 = vector.load %arg1[%c0, %c0_0] : memref<8x16xf32, #tpu.memory_space<vmem>>, vector<8x16xf32>
    %c0_1 = arith.constant 0 : index
    %c0_2 = arith.constant 0 : index
    %1 = vector.load %arg2[%c0_1, %c0_2] : memref<8x8xf32, #tpu.memory_space<vmem>>, vector<8x8xf32>
    %c0_3 = arith.constant 0 : index
    %c0_4 = arith.constant 0 : index
    %2 = vector.load %arg20[%c0_3, %c0_4] : memref<32x4xf32, #tpu.memory_space<vmem>>, vector<32x4xf32>
    %c0_5 = arith.constant 0 : index
    %c0_6 = arith.constant 0 : index
    %3 = vector.load %arg21[%c0_5, %c0_6] : memref<4x32xf32, #tpu.memory_space<vmem>>, vector<4x32xf32>
    %c0_7 = arith.constant 0 : index
    %c0_8 = arith.constant 0 : index
    %4 = vector.load %arg3[%c0_7, %c0_8] : memref<16x32xf32, #tpu.memory_space<vmem>>, vector<16x32xf32>
    %cst = arith.constant dense<0.000000e+00> : vector<8x32xf32>
    %5 = tpu.matmul %0, %4, %cst {dimension_numbers = #tpu.dot_dimension_numbers<[1], [0], [0], [1], [0, 0, 1, 1], [], []>} : vector<8x16xf32>, vector<16x32xf32>, vector<8x32xf32> -> vector<8x32xf32>
    %c0_9 = arith.constant 0 : index
    %c0_10 = arith.constant 0 : index
    %6 = vector.load %arg4[%c0_9, %c0_10] : memref<1x32xf32, #tpu.memory_space<vmem>>, vector<1x32xf32>
    %7 = vector.broadcast %6 : vector<1x32xf32> to vector<8x32xf32>
    %8 = arith.addf %5, %7 : vector<8x32xf32>
    %c0_11 = arith.constant 0 : index
    %c0_12 = arith.constant 0 : index
    %9 = vector.load %arg5[%c0_11, %c0_12] : memref<8x32xf32, #tpu.memory_space<vmem>>, vector<8x32xf32>
    %cst_13 = arith.constant dense<0.000000e+00> : vector<8x32xf32>
    %10 = tpu.matmul %1, %9, %cst_13 {dimension_numbers = #tpu.dot_dimension_numbers<[1], [0], [0], [1], [0, 0, 1, 1], [], []>} : vector<8x8xf32>, vector<8x32xf32>, vector<8x32xf32> -> vector<8x32xf32>
    %c0_14 = arith.constant 0 : index
    %c0_15 = arith.constant 0 : index
    %11 = vector.load %arg6[%c0_14, %c0_15] : memref<1x32xf32, #tpu.memory_space<vmem>>, vector<1x32xf32>
    %12 = vector.broadcast %11 : vector<1x32xf32> to vector<8x32xf32>
    %13 = arith.addf %10, %12 : vector<8x32xf32>
    %14 = tpu.concatenate %8, %13 in 0 : vector<8x32xf32>, vector<8x32xf32> -> vector<16x32xf32>
    %c0_16 = arith.constant 0 : index
    %c0_17 = arith.constant 0 : index
    %c0_18 = arith.constant 0 : index
    %15 = vector.load %arg7[%c0_16, %c0_17, %c0_18] : memref<3x32x96xf32, #tpu.memory_space<vmem>>, vector<1x32x96xf32>
    %16 = vector.shape_cast %15 : vector<1x32x96xf32> to vector<32x96xf32>
    %cst_19 = arith.constant dense<0.000000e+00> : vector<16x96xf32>
    %17 = tpu.matmul %14, %16, %cst_19 {dimension_numbers = #tpu.dot_dimension_numbers<[1], [0], [0], [1], [0, 0, 1, 1], [], []>} : vector<16x32xf32>, vector<32x96xf32>, vector<16x96xf32> -> vector<16x96xf32>
    %c0_20 = arith.constant 0 : index
    %c0_21 = arith.constant 0 : index
    %c0_22 = arith.constant 0 : index
    %18 = vector.load %arg8[%c0_20, %c0_21, %c0_22] : memref<3x1x96xf32, #tpu.memory_space<vmem>>, vector<1x1x96xf32>
    %19 = vector.shape_cast %18 : vector<1x1x96xf32> to vector<1x96xf32>
    %20 = vector.broadcast %19 : vector<1x96xf32> to vector<16x96xf32>
    %21 = arith.addf %17, %20 : vector<16x96xf32>
    %22 = vector.extract_strided_slice %21 {offsets = [0, 0], sizes = [16, 32], strides = [1, 1]} : vector<16x96xf32> to vector<16x32xf32>
    %23 = vector.extract_strided_slice %21 {offsets = [0, 32], sizes = [16, 32], strides = [1, 1]} : vector<16x96xf32> to vector<16x32xf32>
    %24 = vector.extract_strided_slice %21 {offsets = [0, 64], sizes = [16, 32], strides = [1, 1]} : vector<16x96xf32> to vector<16x32xf32>
    %25 = vector.extract_strided_slice %21 {offsets = [0, 32], sizes = [16, 64], strides = [1, 1]} : vector<16x96xf32> to vector<16x64xf32>
    %c8_i32 = arith.constant 8 : i32
    %26 = tpu.dynamic_rotate %25 by %c8_i32 dim 0 : vector<16x64xf32>, i32 -> vector<16x64xf32>
    %27 = vector.extract_strided_slice %26 {offsets = [0, 0], sizes = [16, 32], strides = [1, 1]} : vector<16x64xf32> to vector<16x32xf32>
    %28 = vector.extract_strided_slice %26 {offsets = [0, 32], sizes = [16, 32], strides = [1, 1]} : vector<16x64xf32> to vector<16x32xf32>
    %29 = arith.subf %23, %27 : vector<16x32xf32>
    %30 = arith.mulf %22, %29 : vector<16x32xf32>
    %cst_23 = arith.constant dense<0.000000e+00> : vector<16x4xf32>
    %31 = tpu.matmul %30, %2, %cst_23 {dimension_numbers = #tpu.dot_dimension_numbers<[1], [0], [0], [1], [0, 0, 1, 1], [], []>} : vector<16x32xf32>, vector<32x4xf32>, vector<16x4xf32> -> vector<16x4xf32>
    %cst_24 = arith.constant 0.000000e+00 : f32
    %32 = vector.broadcast %cst_24 : f32 to vector<16x4xf32>
    %33 = arith.subf %32, %31 : vector<16x4xf32>
    %34 = math.exp %33 : vector<16x4xf32>
    %cst_25 = arith.constant 1.000000e+00 : f32
    %35 = vector.broadcast %cst_25 : f32 to vector<16x4xf32>
    %36 = arith.addf %35, %34 : vector<16x4xf32>
    %cst_26 = arith.constant 1.000000e+00 : f32
    %37 = vector.broadcast %cst_26 : f32 to vector<16x4xf32>
    %38 = arith.divf %37, %36 : vector<16x4xf32>
    %cst_27 = arith.constant dense<0.000000e+00> : vector<16x32xf32>
    %39 = tpu.matmul %38, %3, %cst_27 {dimension_numbers = #tpu.dot_dimension_numbers<[1], [0], [0], [1], [0, 0, 1, 1], [], []>} : vector<16x4xf32>, vector<4x32xf32>, vector<16x32xf32> -> vector<16x32xf32>
    %40 = arith.subf %24, %28 : vector<16x32xf32>
    %41 = arith.mulf %39, %40 : vector<16x32xf32>
    %42 = arith.addf %28, %41 : vector<16x32xf32>
    %c0_28 = arith.constant 0 : index
    %c0_29 = arith.constant 0 : index
    %c0_30 = arith.constant 0 : index
    %43 = vector.load %arg9[%c0_28, %c0_29, %c0_30] : memref<3x32x32xf32, #tpu.memory_space<vmem>>, vector<1x32x32xf32>
    %44 = vector.shape_cast %43 : vector<1x32x32xf32> to vector<32x32xf32>
    %cst_31 = arith.constant dense<0.000000e+00> : vector<16x32xf32>
    %45 = tpu.matmul %42, %44, %cst_31 {dimension_numbers = #tpu.dot_dimension_numbers<[1], [0], [0], [1], [0, 0, 1, 1], [], []>} : vector<16x32xf32>, vector<32x32xf32>, vector<16x32xf32> -> vector<16x32xf32>
    %c0_32 = arith.constant 0 : index
    %c0_33 = arith.constant 0 : index
    %c0_34 = arith.constant 0 : index
    %46 = vector.load %arg10[%c0_32, %c0_33, %c0_34] : memref<3x1x32xf32, #tpu.memory_space<vmem>>, vector<1x1x32xf32>
    %47 = vector.shape_cast %46 : vector<1x1x32xf32> to vector<1x32xf32>
    %48 = vector.broadcast %47 : vector<1x32xf32> to vector<16x32xf32>
    %49 = arith.addf %45, %48 : vector<16x32xf32>
    %c0_35 = arith.constant 0 : index
    %c0_36 = arith.constant 0 : index
    %c0_37 = arith.constant 0 : index
    %50 = vector.load %arg15[%c0_35, %c0_36, %c0_37] : memref<3x4x32xf32, #tpu.memory_space<vmem>>, vector<1x4x32xf32>
    %51 = vector.shape_cast %50 : vector<1x4x32xf32> to vector<4x32xf32>
    %52 = arith.addf %14, %49 : vector<16x32xf32>
    %53 = vector.extract_strided_slice %51 {offsets = [0, 0], sizes = [1, 32], strides = [1, 1]} : vector<4x32xf32> to vector<1x32xf32>
    %54 = vector.extract_strided_slice %51 {offsets = [1, 0], sizes = [1, 32], strides = [1, 1]} : vector<4x32xf32> to vector<1x32xf32>
    %cst_38 = arith.constant dense<0.000000e+00> : vector<16xf32>
    %55 = vector.multi_reduction <add>, %52, %cst_38 [1] : vector<16x32xf32> to vector<16xf32>
    %56 = vector.shape_cast %55 : vector<16xf32> to vector<16x1xf32>
    %cst_39 = arith.constant 3.200000e+01 : f32
    %57 = vector.broadcast %cst_39 : f32 to vector<16x1xf32>
    %58 = arith.divf %56, %57 : vector<16x1xf32>
    %59 = vector.broadcast %58 : vector<16x1xf32> to vector<16x32xf32>
    %60 = arith.subf %52, %59 : vector<16x32xf32>
    %61 = arith.mulf %60, %60 : vector<16x32xf32>
    %cst_40 = arith.constant dense<0.000000e+00> : vector<16xf32>
    %62 = vector.multi_reduction <add>, %61, %cst_40 [1] : vector<16x32xf32> to vector<16xf32>
    %63 = vector.shape_cast %62 : vector<16xf32> to vector<16x1xf32>
    %cst_41 = arith.constant 3.200000e+01 : f32
    %64 = vector.broadcast %cst_41 : f32 to vector<16x1xf32>
    %65 = arith.divf %63, %64 : vector<16x1xf32>
    %cst_42 = arith.constant 9.99999974E-6 : f32
    %66 = vector.broadcast %cst_42 : f32 to vector<16x1xf32>
    %67 = arith.addf %65, %66 : vector<16x1xf32>
    %68 = math.rsqrt %67 : vector<16x1xf32>
    %69 = vector.broadcast %68 : vector<16x1xf32> to vector<16x32xf32>
    %70 = arith.mulf %60, %69 : vector<16x32xf32>
    %71 = vector.broadcast %53 : vector<1x32xf32> to vector<16x32xf32>
    %72 = arith.mulf %70, %71 : vector<16x32xf32>
    %73 = vector.broadcast %54 : vector<1x32xf32> to vector<16x32xf32>
    %74 = arith.addf %72, %73 : vector<16x32xf32>
    %c0_43 = arith.constant 0 : index
    %c0_44 = arith.constant 0 : index
    %c0_45 = arith.constant 0 : index
    %75 = vector.load %arg11[%c0_43, %c0_44, %c0_45] : memref<3x32x128xf32, #tpu.memory_space<vmem>>, vector<1x32x128xf32>
    %76 = vector.shape_cast %75 : vector<1x32x128xf32> to vector<32x128xf32>
    %cst_46 = arith.constant dense<0.000000e+00> : vector<16x128xf32>
    %77 = tpu.matmul %74, %76, %cst_46 {dimension_numbers = #tpu.dot_dimension_numbers<[1], [0], [0], [1], [0, 0, 1, 1], [], []>} : vector<16x32xf32>, vector<32x128xf32>, vector<16x128xf32> -> vector<16x128xf32>
    %c0_47 = arith.constant 0 : index
    %c0_48 = arith.constant 0 : index
    %c0_49 = arith.constant 0 : index
    %78 = vector.load %arg12[%c0_47, %c0_48, %c0_49] : memref<3x1x128xf32, #tpu.memory_space<vmem>>, vector<1x1x128xf32>
    %79 = vector.shape_cast %78 : vector<1x1x128xf32> to vector<1x128xf32>
    %80 = vector.broadcast %79 : vector<1x128xf32> to vector<16x128xf32>
    %81 = arith.addf %77, %80 : vector<16x128xf32>
    %cst_50 = arith.constant 0.000000e+00 : f32
    %82 = vector.broadcast %cst_50 : f32 to vector<16x128xf32>
    %83 = arith.maximumf %81, %82 : vector<16x128xf32>
    %c0_51 = arith.constant 0 : index
    %c0_52 = arith.constant 0 : index
    %c0_53 = arith.constant 0 : index
    %84 = vector.load %arg13[%c0_51, %c0_52, %c0_53] : memref<3x128x32xf32, #tpu.memory_space<vmem>>, vector<1x128x32xf32>
    %85 = vector.shape_cast %84 : vector<1x128x32xf32> to vector<128x32xf32>
    %cst_54 = arith.constant dense<0.000000e+00> : vector<16x32xf32>
    %86 = tpu.matmul %83, %85, %cst_54 {dimension_numbers = #tpu.dot_dimension_numbers<[1], [0], [0], [1], [0, 0, 1, 1], [], []>} : vector<16x128xf32>, vector<128x32xf32>, vector<16x32xf32> -> vector<16x32xf32>
    %c0_55 = arith.constant 0 : index
    %c0_56 = arith.constant 0 : index
    %c0_57 = arith.constant 0 : index
    %87 = vector.load %arg14[%c0_55, %c0_56, %c0_57] : memref<3x1x32xf32, #tpu.memory_space<vmem>>, vector<1x1x32xf32>
    %88 = vector.shape_cast %87 : vector<1x1x32xf32> to vector<1x32xf32>
    %89 = vector.broadcast %88 : vector<1x32xf32> to vector<16x32xf32>
    %90 = arith.addf %86, %89 : vector<16x32xf32>
    %91 = arith.addf %74, %90 : vector<16x32xf32>
    %92 = vector.extract_strided_slice %51 {offsets = [2, 0], sizes = [1, 32], strides = [1, 1]} : vector<4x32xf32> to vector<1x32xf32>
    %93 = vector.extract_strided_slice %51 {offsets = [3, 0], sizes = [1, 32], strides = [1, 1]} : vector<4x32xf32> to vector<1x32xf32>
    %cst_58 = arith.constant dense<0.000000e+00> : vector<16xf32>
    %94 = vector.multi_reduction <add>, %91, %cst_58 [1] : vector<16x32xf32> to vector<16xf32>
    %95 = vector.shape_cast %94 : vector<16xf32> to vector<16x1xf32>
    %cst_59 = arith.constant 3.200000e+01 : f32
    %96 = vector.broadcast %cst_59 : f32 to vector<16x1xf32>
    %97 = arith.divf %95, %96 : vector<16x1xf32>
    %98 = vector.broadcast %97 : vector<16x1xf32> to vector<16x32xf32>
    %99 = arith.subf %91, %98 : vector<16x32xf32>
    %100 = arith.mulf %99, %99 : vector<16x32xf32>
    %cst_60 = arith.constant dense<0.000000e+00> : vector<16xf32>
    %101 = vector.multi_reduction <add>, %100, %cst_60 [1] : vector<16x32xf32> to vector<16xf32>
    %102 = vector.shape_cast %101 : vector<16xf32> to vector<16x1xf32>
    %cst_61 = arith.constant 3.200000e+01 : f32
    %103 = vector.broadcast %cst_61 : f32 to vector<16x1xf32>
    %104 = arith.divf %102, %103 : vector<16x1xf32>
    %cst_62 = arith.constant 9.99999974E-6 : f32
    %105 = vector.broadcast %cst_62 : f32 to vector<16x1xf32>
    %106 = arith.addf %104, %105 : vector<16x1xf32>
    %107 = math.rsqrt %106 : vector<16x1xf32>
    %108 = vector.broadcast %107 : vector<16x1xf32> to vector<16x32xf32>
    %109 = arith.mulf %99, %108 : vector<16x32xf32>
    %110 = vector.broadcast %92 : vector<1x32xf32> to vector<16x32xf32>
    %111 = arith.mulf %109, %110 : vector<16x32xf32>
    %112 = vector.broadcast %93 : vector<1x32xf32> to vector<16x32xf32>
    %113 = arith.addf %111, %112 : vector<16x32xf32>
    %c1 = arith.constant 1 : index
    %c0_63 = arith.constant 0 : index
    %c0_64 = arith.constant 0 : index
    %114 = vector.load %arg7[%c1, %c0_63, %c0_64] : memref<3x32x96xf32, #tpu.memory_space<vmem>>, vector<1x32x96xf32>
    %115 = vector.shape_cast %114 : vector<1x32x96xf32> to vector<32x96xf32>
    %cst_65 = arith.constant dense<0.000000e+00> : vector<16x96xf32>
    %116 = tpu.matmul %113, %115, %cst_65 {dimension_numbers = #tpu.dot_dimension_numbers<[1], [0], [0], [1], [0, 0, 1, 1], [], []>} : vector<16x32xf32>, vector<32x96xf32>, vector<16x96xf32> -> vector<16x96xf32>
    %c1_66 = arith.constant 1 : index
    %c0_67 = arith.constant 0 : index
    %c0_68 = arith.constant 0 : index
    %117 = vector.load %arg8[%c1_66, %c0_67, %c0_68] : memref<3x1x96xf32, #tpu.memory_space<vmem>>, vector<1x1x96xf32>
    %118 = vector.shape_cast %117 : vector<1x1x96xf32> to vector<1x96xf32>
    %119 = vector.broadcast %118 : vector<1x96xf32> to vector<16x96xf32>
    %120 = arith.addf %116, %119 : vector<16x96xf32>
    %121 = vector.extract_strided_slice %120 {offsets = [0, 0], sizes = [16, 32], strides = [1, 1]} : vector<16x96xf32> to vector<16x32xf32>
    %122 = vector.extract_strided_slice %120 {offsets = [0, 32], sizes = [16, 32], strides = [1, 1]} : vector<16x96xf32> to vector<16x32xf32>
    %123 = vector.extract_strided_slice %120 {offsets = [0, 64], sizes = [16, 32], strides = [1, 1]} : vector<16x96xf32> to vector<16x32xf32>
    %124 = vector.extract_strided_slice %120 {offsets = [0, 32], sizes = [16, 64], strides = [1, 1]} : vector<16x96xf32> to vector<16x64xf32>
    %c8_i32_69 = arith.constant 8 : i32
    %125 = tpu.dynamic_rotate %124 by %c8_i32_69 dim 0 : vector<16x64xf32>, i32 -> vector<16x64xf32>
    %126 = vector.extract_strided_slice %125 {offsets = [0, 0], sizes = [16, 32], strides = [1, 1]} : vector<16x64xf32> to vector<16x32xf32>
    %127 = vector.extract_strided_slice %125 {offsets = [0, 32], sizes = [16, 32], strides = [1, 1]} : vector<16x64xf32> to vector<16x32xf32>
    %128 = arith.subf %122, %126 : vector<16x32xf32>
    %129 = arith.mulf %121, %128 : vector<16x32xf32>
    %cst_70 = arith.constant dense<0.000000e+00> : vector<16x4xf32>
    %130 = tpu.matmul %129, %2, %cst_70 {dimension_numbers = #tpu.dot_dimension_numbers<[1], [0], [0], [1], [0, 0, 1, 1], [], []>} : vector<16x32xf32>, vector<32x4xf32>, vector<16x4xf32> -> vector<16x4xf32>
    %cst_71 = arith.constant 0.000000e+00 : f32
    %131 = vector.broadcast %cst_71 : f32 to vector<16x4xf32>
    %132 = arith.subf %131, %130 : vector<16x4xf32>
    %133 = math.exp %132 : vector<16x4xf32>
    %cst_72 = arith.constant 1.000000e+00 : f32
    %134 = vector.broadcast %cst_72 : f32 to vector<16x4xf32>
    %135 = arith.addf %134, %133 : vector<16x4xf32>
    %cst_73 = arith.constant 1.000000e+00 : f32
    %136 = vector.broadcast %cst_73 : f32 to vector<16x4xf32>
    %137 = arith.divf %136, %135 : vector<16x4xf32>
    %cst_74 = arith.constant dense<0.000000e+00> : vector<16x32xf32>
    %138 = tpu.matmul %137, %3, %cst_74 {dimension_numbers = #tpu.dot_dimension_numbers<[1], [0], [0], [1], [0, 0, 1, 1], [], []>} : vector<16x4xf32>, vector<4x32xf32>, vector<16x32xf32> -> vector<16x32xf32>
    %139 = arith.subf %123, %127 : vector<16x32xf32>
    %140 = arith.mulf %138, %139 : vector<16x32xf32>
    %141 = arith.addf %127, %140 : vector<16x32xf32>
    %c1_75 = arith.constant 1 : index
    %c0_76 = arith.constant 0 : index
    %c0_77 = arith.constant 0 : index
    %142 = vector.load %arg9[%c1_75, %c0_76, %c0_77] : memref<3x32x32xf32, #tpu.memory_space<vmem>>, vector<1x32x32xf32>
    %143 = vector.shape_cast %142 : vector<1x32x32xf32> to vector<32x32xf32>
    %cst_78 = arith.constant dense<0.000000e+00> : vector<16x32xf32>
    %144 = tpu.matmul %141, %143, %cst_78 {dimension_numbers = #tpu.dot_dimension_numbers<[1], [0], [0], [1], [0, 0, 1, 1], [], []>} : vector<16x32xf32>, vector<32x32xf32>, vector<16x32xf32> -> vector<16x32xf32>
    %c1_79 = arith.constant 1 : index
    %c0_80 = arith.constant 0 : index
    %c0_81 = arith.constant 0 : index
    %145 = vector.load %arg10[%c1_79, %c0_80, %c0_81] : memref<3x1x32xf32, #tpu.memory_space<vmem>>, vector<1x1x32xf32>
    %146 = vector.shape_cast %145 : vector<1x1x32xf32> to vector<1x32xf32>
    %147 = vector.broadcast %146 : vector<1x32xf32> to vector<16x32xf32>
    %148 = arith.addf %144, %147 : vector<16x32xf32>
    %c1_82 = arith.constant 1 : index
    %c0_83 = arith.constant 0 : index
    %c0_84 = arith.constant 0 : index
    %149 = vector.load %arg15[%c1_82, %c0_83, %c0_84] : memref<3x4x32xf32, #tpu.memory_space<vmem>>, vector<1x4x32xf32>
    %150 = vector.shape_cast %149 : vector<1x4x32xf32> to vector<4x32xf32>
    %151 = arith.addf %113, %148 : vector<16x32xf32>
    %152 = vector.extract_strided_slice %150 {offsets = [0, 0], sizes = [1, 32], strides = [1, 1]} : vector<4x32xf32> to vector<1x32xf32>
    %153 = vector.extract_strided_slice %150 {offsets = [1, 0], sizes = [1, 32], strides = [1, 1]} : vector<4x32xf32> to vector<1x32xf32>
    %cst_85 = arith.constant dense<0.000000e+00> : vector<16xf32>
    %154 = vector.multi_reduction <add>, %151, %cst_85 [1] : vector<16x32xf32> to vector<16xf32>
    %155 = vector.shape_cast %154 : vector<16xf32> to vector<16x1xf32>
    %cst_86 = arith.constant 3.200000e+01 : f32
    %156 = vector.broadcast %cst_86 : f32 to vector<16x1xf32>
    %157 = arith.divf %155, %156 : vector<16x1xf32>
    %158 = vector.broadcast %157 : vector<16x1xf32> to vector<16x32xf32>
    %159 = arith.subf %151, %158 : vector<16x32xf32>
    %160 = arith.mulf %159, %159 : vector<16x32xf32>
    %cst_87 = arith.constant dense<0.000000e+00> : vector<16xf32>
    %161 = vector.multi_reduction <add>, %160, %cst_87 [1] : vector<16x32xf32> to vector<16xf32>
    %162 = vector.shape_cast %161 : vector<16xf32> to vector<16x1xf32>
    %cst_88 = arith.constant 3.200000e+01 : f32
    %163 = vector.broadcast %cst_88 : f32 to vector<16x1xf32>
    %164 = arith.divf %162, %163 : vector<16x1xf32>
    %cst_89 = arith.constant 9.99999974E-6 : f32
    %165 = vector.broadcast %cst_89 : f32 to vector<16x1xf32>
    %166 = arith.addf %164, %165 : vector<16x1xf32>
    %167 = math.rsqrt %166 : vector<16x1xf32>
    %168 = vector.broadcast %167 : vector<16x1xf32> to vector<16x32xf32>
    %169 = arith.mulf %159, %168 : vector<16x32xf32>
    %170 = vector.broadcast %152 : vector<1x32xf32> to vector<16x32xf32>
    %171 = arith.mulf %169, %170 : vector<16x32xf32>
    %172 = vector.broadcast %153 : vector<1x32xf32> to vector<16x32xf32>
    %173 = arith.addf %171, %172 : vector<16x32xf32>
    %c1_90 = arith.constant 1 : index
    %c0_91 = arith.constant 0 : index
    %c0_92 = arith.constant 0 : index
    %174 = vector.load %arg11[%c1_90, %c0_91, %c0_92] : memref<3x32x128xf32, #tpu.memory_space<vmem>>, vector<1x32x128xf32>
    %175 = vector.shape_cast %174 : vector<1x32x128xf32> to vector<32x128xf32>
    %cst_93 = arith.constant dense<0.000000e+00> : vector<16x128xf32>
    %176 = tpu.matmul %173, %175, %cst_93 {dimension_numbers = #tpu.dot_dimension_numbers<[1], [0], [0], [1], [0, 0, 1, 1], [], []>} : vector<16x32xf32>, vector<32x128xf32>, vector<16x128xf32> -> vector<16x128xf32>
    %c1_94 = arith.constant 1 : index
    %c0_95 = arith.constant 0 : index
    %c0_96 = arith.constant 0 : index
    %177 = vector.load %arg12[%c1_94, %c0_95, %c0_96] : memref<3x1x128xf32, #tpu.memory_space<vmem>>, vector<1x1x128xf32>
    %178 = vector.shape_cast %177 : vector<1x1x128xf32> to vector<1x128xf32>
    %179 = vector.broadcast %178 : vector<1x128xf32> to vector<16x128xf32>
    %180 = arith.addf %176, %179 : vector<16x128xf32>
    %cst_97 = arith.constant 0.000000e+00 : f32
    %181 = vector.broadcast %cst_97 : f32 to vector<16x128xf32>
    %182 = arith.maximumf %180, %181 : vector<16x128xf32>
    %c1_98 = arith.constant 1 : index
    %c0_99 = arith.constant 0 : index
    %c0_100 = arith.constant 0 : index
    %183 = vector.load %arg13[%c1_98, %c0_99, %c0_100] : memref<3x128x32xf32, #tpu.memory_space<vmem>>, vector<1x128x32xf32>
    %184 = vector.shape_cast %183 : vector<1x128x32xf32> to vector<128x32xf32>
    %cst_101 = arith.constant dense<0.000000e+00> : vector<16x32xf32>
    %185 = tpu.matmul %182, %184, %cst_101 {dimension_numbers = #tpu.dot_dimension_numbers<[1], [0], [0], [1], [0, 0, 1, 1], [], []>} : vector<16x128xf32>, vector<128x32xf32>, vector<16x32xf32> -> vector<16x32xf32>
    %c1_102 = arith.constant 1 : index
    %c0_103 = arith.constant 0 : index
    %c0_104 = arith.constant 0 : index
    %186 = vector.load %arg14[%c1_102, %c0_103, %c0_104] : memref<3x1x32xf32, #tpu.memory_space<vmem>>, vector<1x1x32xf32>
    %187 = vector.shape_cast %186 : vector<1x1x32xf32> to vector<1x32xf32>
    %188 = vector.broadcast %187 : vector<1x32xf32> to vector<16x32xf32>
    %189 = arith.addf %185, %188 : vector<16x32xf32>
    %190 = arith.addf %173, %189 : vector<16x32xf32>
    %191 = vector.extract_strided_slice %150 {offsets = [2, 0], sizes = [1, 32], strides = [1, 1]} : vector<4x32xf32> to vector<1x32xf32>
    %192 = vector.extract_strided_slice %150 {offsets = [3, 0], sizes = [1, 32], strides = [1, 1]} : vector<4x32xf32> to vector<1x32xf32>
    %cst_105 = arith.constant dense<0.000000e+00> : vector<16xf32>
    %193 = vector.multi_reduction <add>, %190, %cst_105 [1] : vector<16x32xf32> to vector<16xf32>
    %194 = vector.shape_cast %193 : vector<16xf32> to vector<16x1xf32>
    %cst_106 = arith.constant 3.200000e+01 : f32
    %195 = vector.broadcast %cst_106 : f32 to vector<16x1xf32>
    %196 = arith.divf %194, %195 : vector<16x1xf32>
    %197 = vector.broadcast %196 : vector<16x1xf32> to vector<16x32xf32>
    %198 = arith.subf %190, %197 : vector<16x32xf32>
    %199 = arith.mulf %198, %198 : vector<16x32xf32>
    %cst_107 = arith.constant dense<0.000000e+00> : vector<16xf32>
    %200 = vector.multi_reduction <add>, %199, %cst_107 [1] : vector<16x32xf32> to vector<16xf32>
    %201 = vector.shape_cast %200 : vector<16xf32> to vector<16x1xf32>
    %cst_108 = arith.constant 3.200000e+01 : f32
    %202 = vector.broadcast %cst_108 : f32 to vector<16x1xf32>
    %203 = arith.divf %201, %202 : vector<16x1xf32>
    %cst_109 = arith.constant 9.99999974E-6 : f32
    %204 = vector.broadcast %cst_109 : f32 to vector<16x1xf32>
    %205 = arith.addf %203, %204 : vector<16x1xf32>
    %206 = math.rsqrt %205 : vector<16x1xf32>
    %207 = vector.broadcast %206 : vector<16x1xf32> to vector<16x32xf32>
    %208 = arith.mulf %198, %207 : vector<16x32xf32>
    %209 = vector.broadcast %191 : vector<1x32xf32> to vector<16x32xf32>
    %210 = arith.mulf %208, %209 : vector<16x32xf32>
    %211 = vector.broadcast %192 : vector<1x32xf32> to vector<16x32xf32>
    %212 = arith.addf %210, %211 : vector<16x32xf32>
    %c2 = arith.constant 2 : index
    %c0_110 = arith.constant 0 : index
    %c0_111 = arith.constant 0 : index
    %213 = vector.load %arg7[%c2, %c0_110, %c0_111] : memref<3x32x96xf32, #tpu.memory_space<vmem>>, vector<1x32x96xf32>
    %214 = vector.shape_cast %213 : vector<1x32x96xf32> to vector<32x96xf32>
    %cst_112 = arith.constant dense<0.000000e+00> : vector<16x96xf32>
    %215 = tpu.matmul %212, %214, %cst_112 {dimension_numbers = #tpu.dot_dimension_numbers<[1], [0], [0], [1], [0, 0, 1, 1], [], []>} : vector<16x32xf32>, vector<32x96xf32>, vector<16x96xf32> -> vector<16x96xf32>
    %c2_113 = arith.constant 2 : index
    %c0_114 = arith.constant 0 : index
    %c0_115 = arith.constant 0 : index
    %216 = vector.load %arg8[%c2_113, %c0_114, %c0_115] : memref<3x1x96xf32, #tpu.memory_space<vmem>>, vector<1x1x96xf32>
    %217 = vector.shape_cast %216 : vector<1x1x96xf32> to vector<1x96xf32>
    %218 = vector.broadcast %217 : vector<1x96xf32> to vector<16x96xf32>
    %219 = arith.addf %215, %218 : vector<16x96xf32>
    %220 = vector.extract_strided_slice %219 {offsets = [0, 0], sizes = [16, 32], strides = [1, 1]} : vector<16x96xf32> to vector<16x32xf32>
    %221 = vector.extract_strided_slice %219 {offsets = [0, 32], sizes = [16, 32], strides = [1, 1]} : vector<16x96xf32> to vector<16x32xf32>
    %222 = vector.extract_strided_slice %219 {offsets = [0, 64], sizes = [16, 32], strides = [1, 1]} : vector<16x96xf32> to vector<16x32xf32>
    %223 = vector.extract_strided_slice %219 {offsets = [0, 32], sizes = [16, 64], strides = [1, 1]} : vector<16x96xf32> to vector<16x64xf32>
    %c8_i32_116 = arith.constant 8 : i32
    %224 = tpu.dynamic_rotate %223 by %c8_i32_116 dim 0 : vector<16x64xf32>, i32 -> vector<16x64xf32>
    %225 = vector.extract_strided_slice %224 {offsets = [0, 0], sizes = [16, 32], strides = [1, 1]} : vector<16x64xf32> to vector<16x32xf32>
    %226 = vector.extract_strided_slice %224 {offsets = [0, 32], sizes = [16, 32], strides = [1, 1]} : vector<16x64xf32> to vector<16x32xf32>
    %227 = arith.subf %221, %225 : vector<16x32xf32>
    %228 = arith.mulf %220, %227 : vector<16x32xf32>
    %cst_117 = arith.constant dense<0.000000e+00> : vector<16x4xf32>
    %229 = tpu.matmul %228, %2, %cst_117 {dimension_numbers = #tpu.dot_dimension_numbers<[1], [0], [0], [1], [0, 0, 1, 1], [], []>} : vector<16x32xf32>, vector<32x4xf32>, vector<16x4xf32> -> vector<16x4xf32>
    %cst_118 = arith.constant 0.000000e+00 : f32
    %230 = vector.broadcast %cst_118 : f32 to vector<16x4xf32>
    %231 = arith.subf %230, %229 : vector<16x4xf32>
    %232 = math.exp %231 : vector<16x4xf32>
    %cst_119 = arith.constant 1.000000e+00 : f32
    %233 = vector.broadcast %cst_119 : f32 to vector<16x4xf32>
    %234 = arith.addf %233, %232 : vector<16x4xf32>
    %cst_120 = arith.constant 1.000000e+00 : f32
    %235 = vector.broadcast %cst_120 : f32 to vector<16x4xf32>
    %236 = arith.divf %235, %234 : vector<16x4xf32>
    %cst_121 = arith.constant dense<0.000000e+00> : vector<16x32xf32>
    %237 = tpu.matmul %236, %3, %cst_121 {dimension_numbers = #tpu.dot_dimension_numbers<[1], [0], [0], [1], [0, 0, 1, 1], [], []>} : vector<16x4xf32>, vector<4x32xf32>, vector<16x32xf32> -> vector<16x32xf32>
    %238 = arith.subf %222, %226 : vector<16x32xf32>
    %239 = arith.mulf %237, %238 : vector<16x32xf32>
    %240 = arith.addf %226, %239 : vector<16x32xf32>
    %c2_122 = arith.constant 2 : index
    %c0_123 = arith.constant 0 : index
    %c0_124 = arith.constant 0 : index
    %241 = vector.load %arg9[%c2_122, %c0_123, %c0_124] : memref<3x32x32xf32, #tpu.memory_space<vmem>>, vector<1x32x32xf32>
    %242 = vector.shape_cast %241 : vector<1x32x32xf32> to vector<32x32xf32>
    %cst_125 = arith.constant dense<0.000000e+00> : vector<16x32xf32>
    %243 = tpu.matmul %240, %242, %cst_125 {dimension_numbers = #tpu.dot_dimension_numbers<[1], [0], [0], [1], [0, 0, 1, 1], [], []>} : vector<16x32xf32>, vector<32x32xf32>, vector<16x32xf32> -> vector<16x32xf32>
    %c2_126 = arith.constant 2 : index
    %c0_127 = arith.constant 0 : index
    %c0_128 = arith.constant 0 : index
    %244 = vector.load %arg10[%c2_126, %c0_127, %c0_128] : memref<3x1x32xf32, #tpu.memory_space<vmem>>, vector<1x1x32xf32>
    %245 = vector.shape_cast %244 : vector<1x1x32xf32> to vector<1x32xf32>
    %246 = vector.broadcast %245 : vector<1x32xf32> to vector<16x32xf32>
    %247 = arith.addf %243, %246 : vector<16x32xf32>
    %c2_129 = arith.constant 2 : index
    %c0_130 = arith.constant 0 : index
    %c0_131 = arith.constant 0 : index
    %248 = vector.load %arg15[%c2_129, %c0_130, %c0_131] : memref<3x4x32xf32, #tpu.memory_space<vmem>>, vector<1x4x32xf32>
    %249 = vector.shape_cast %248 : vector<1x4x32xf32> to vector<4x32xf32>
    %250 = arith.addf %212, %247 : vector<16x32xf32>
    %251 = vector.extract_strided_slice %249 {offsets = [0, 0], sizes = [1, 32], strides = [1, 1]} : vector<4x32xf32> to vector<1x32xf32>
    %252 = vector.extract_strided_slice %249 {offsets = [1, 0], sizes = [1, 32], strides = [1, 1]} : vector<4x32xf32> to vector<1x32xf32>
    %cst_132 = arith.constant dense<0.000000e+00> : vector<16xf32>
    %253 = vector.multi_reduction <add>, %250, %cst_132 [1] : vector<16x32xf32> to vector<16xf32>
    %254 = vector.shape_cast %253 : vector<16xf32> to vector<16x1xf32>
    %cst_133 = arith.constant 3.200000e+01 : f32
    %255 = vector.broadcast %cst_133 : f32 to vector<16x1xf32>
    %256 = arith.divf %254, %255 : vector<16x1xf32>
    %257 = vector.broadcast %256 : vector<16x1xf32> to vector<16x32xf32>
    %258 = arith.subf %250, %257 : vector<16x32xf32>
    %259 = arith.mulf %258, %258 : vector<16x32xf32>
    %cst_134 = arith.constant dense<0.000000e+00> : vector<16xf32>
    %260 = vector.multi_reduction <add>, %259, %cst_134 [1] : vector<16x32xf32> to vector<16xf32>
    %261 = vector.shape_cast %260 : vector<16xf32> to vector<16x1xf32>
    %cst_135 = arith.constant 3.200000e+01 : f32
    %262 = vector.broadcast %cst_135 : f32 to vector<16x1xf32>
    %263 = arith.divf %261, %262 : vector<16x1xf32>
    %cst_136 = arith.constant 9.99999974E-6 : f32
    %264 = vector.broadcast %cst_136 : f32 to vector<16x1xf32>
    %265 = arith.addf %263, %264 : vector<16x1xf32>
    %266 = math.rsqrt %265 : vector<16x1xf32>
    %267 = vector.broadcast %266 : vector<16x1xf32> to vector<16x32xf32>
    %268 = arith.mulf %258, %267 : vector<16x32xf32>
    %269 = vector.broadcast %251 : vector<1x32xf32> to vector<16x32xf32>
    %270 = arith.mulf %268, %269 : vector<16x32xf32>
    %271 = vector.broadcast %252 : vector<1x32xf32> to vector<16x32xf32>
    %272 = arith.addf %270, %271 : vector<16x32xf32>
    %c2_137 = arith.constant 2 : index
    %c0_138 = arith.constant 0 : index
    %c0_139 = arith.constant 0 : index
    %273 = vector.load %arg11[%c2_137, %c0_138, %c0_139] : memref<3x32x128xf32, #tpu.memory_space<vmem>>, vector<1x32x128xf32>
    %274 = vector.shape_cast %273 : vector<1x32x128xf32> to vector<32x128xf32>
    %cst_140 = arith.constant dense<0.000000e+00> : vector<16x128xf32>
    %275 = tpu.matmul %272, %274, %cst_140 {dimension_numbers = #tpu.dot_dimension_numbers<[1], [0], [0], [1], [0, 0, 1, 1], [], []>} : vector<16x32xf32>, vector<32x128xf32>, vector<16x128xf32> -> vector<16x128xf32>
    %c2_141 = arith.constant 2 : index
    %c0_142 = arith.constant 0 : index
    %c0_143 = arith.constant 0 : index
    %276 = vector.load %arg12[%c2_141, %c0_142, %c0_143] : memref<3x1x128xf32, #tpu.memory_space<vmem>>, vector<1x1x128xf32>
    %277 = vector.shape_cast %276 : vector<1x1x128xf32> to vector<1x128xf32>
    %278 = vector.broadcast %277 : vector<1x128xf32> to vector<16x128xf32>
    %279 = arith.addf %275, %278 : vector<16x128xf32>
    %cst_144 = arith.constant 0.000000e+00 : f32
    %280 = vector.broadcast %cst_144 : f32 to vector<16x128xf32>
    %281 = arith.maximumf %279, %280 : vector<16x128xf32>
    %c2_145 = arith.constant 2 : index
    %c0_146 = arith.constant 0 : index
    %c0_147 = arith.constant 0 : index
    %282 = vector.load %arg13[%c2_145, %c0_146, %c0_147] : memref<3x128x32xf32, #tpu.memory_space<vmem>>, vector<1x128x32xf32>
    %283 = vector.shape_cast %282 : vector<1x128x32xf32> to vector<128x32xf32>
    %cst_148 = arith.constant dense<0.000000e+00> : vector<16x32xf32>
    %284 = tpu.matmul %281, %283, %cst_148 {dimension_numbers = #tpu.dot_dimension_numbers<[1], [0], [0], [1], [0, 0, 1, 1], [], []>} : vector<16x128xf32>, vector<128x32xf32>, vector<16x32xf32> -> vector<16x32xf32>
    %c2_149 = arith.constant 2 : index
    %c0_150 = arith.constant 0 : index
    %c0_151 = arith.constant 0 : index
    %285 = vector.load %arg14[%c2_149, %c0_150, %c0_151] : memref<3x1x32xf32, #tpu.memory_space<vmem>>, vector<1x1x32xf32>
    %286 = vector.shape_cast %285 : vector<1x1x32xf32> to vector<1x32xf32>
    %287 = vector.broadcast %286 : vector<1x32xf32> to vector<16x32xf32>
    %288 = arith.addf %284, %287 : vector<16x32xf32>
    %289 = arith.addf %272, %288 : vector<16x32xf32>
    %290 = vector.extract_strided_slice %249 {offsets = [2, 0], sizes = [1, 32], strides = [1, 1]} : vector<4x32xf32> to vector<1x32xf32>
    %291 = vector.extract_strided_slice %249 {offsets = [3, 0], sizes = [1, 32], strides = [1, 1]} : vector<4x32xf32> to vector<1x32xf32>
    %cst_152 = arith.constant dense<0.000000e+00> : vector<16xf32>
    %292 = vector.multi_reduction <add>, %289, %cst_152 [1] : vector<16x32xf32> to vector<16xf32>
    %293 = vector.shape_cast %292 : vector<16xf32> to vector<16x1xf32>
    %cst_153 = arith.constant 3.200000e+01 : f32
    %294 = vector.broadcast %cst_153 : f32 to vector<16x1xf32>
    %295 = arith.divf %293, %294 : vector<16x1xf32>
    %296 = vector.broadcast %295 : vector<16x1xf32> to vector<16x32xf32>
    %297 = arith.subf %289, %296 : vector<16x32xf32>
    %298 = arith.mulf %297, %297 : vector<16x32xf32>
    %cst_154 = arith.constant dense<0.000000e+00> : vector<16xf32>
    %299 = vector.multi_reduction <add>, %298, %cst_154 [1] : vector<16x32xf32> to vector<16xf32>
    %300 = vector.shape_cast %299 : vector<16xf32> to vector<16x1xf32>
    %cst_155 = arith.constant 3.200000e+01 : f32
    %301 = vector.broadcast %cst_155 : f32 to vector<16x1xf32>
    %302 = arith.divf %300, %301 : vector<16x1xf32>
    %cst_156 = arith.constant 9.99999974E-6 : f32
    %303 = vector.broadcast %cst_156 : f32 to vector<16x1xf32>
    %304 = arith.addf %302, %303 : vector<16x1xf32>
    %305 = math.rsqrt %304 : vector<16x1xf32>
    %306 = vector.broadcast %305 : vector<16x1xf32> to vector<16x32xf32>
    %307 = arith.mulf %297, %306 : vector<16x32xf32>
    %308 = vector.broadcast %290 : vector<1x32xf32> to vector<16x32xf32>
    %309 = arith.mulf %307, %308 : vector<16x32xf32>
    %310 = vector.broadcast %291 : vector<1x32xf32> to vector<16x32xf32>
    %311 = arith.addf %309, %310 : vector<16x32xf32>
    %312 = vector.extract_strided_slice %311 {offsets = [0, 0], sizes = [8, 32], strides = [1, 1]} : vector<16x32xf32> to vector<8x32xf32>
    %313 = vector.extract_strided_slice %311 {offsets = [8, 0], sizes = [8, 32], strides = [1, 1]} : vector<16x32xf32> to vector<8x32xf32>
    %314 = arith.addf %312, %313 : vector<8x32xf32>
    %cst_157 = arith.constant 5.000000e-01 : f32
    %315 = vector.broadcast %cst_157 : f32 to vector<8x32xf32>
    %316 = arith.mulf %314, %315 : vector<8x32xf32>
    %c0_158 = arith.constant 0 : index
    %c0_159 = arith.constant 0 : index
    %317 = vector.load %arg16[%c0_158, %c0_159] : memref<32x32xf32, #tpu.memory_space<vmem>>, vector<32x32xf32>
    %cst_160 = arith.constant dense<0.000000e+00> : vector<8x32xf32>
    %318 = tpu.matmul %316, %317, %cst_160 {dimension_numbers = #tpu.dot_dimension_numbers<[1], [0], [0], [1], [0, 0, 1, 1], [], []>} : vector<8x32xf32>, vector<32x32xf32>, vector<8x32xf32> -> vector<8x32xf32>
    %c0_161 = arith.constant 0 : index
    %c0_162 = arith.constant 0 : index
    %319 = vector.load %arg17[%c0_161, %c0_162] : memref<1x32xf32, #tpu.memory_space<vmem>>, vector<1x32xf32>
    %320 = vector.broadcast %319 : vector<1x32xf32> to vector<8x32xf32>
    %321 = arith.addf %318, %320 : vector<8x32xf32>
    %cst_163 = arith.constant 0.000000e+00 : f32
    %322 = vector.broadcast %cst_163 : f32 to vector<8x32xf32>
    %323 = arith.maximumf %321, %322 : vector<8x32xf32>
    %c0_164 = arith.constant 0 : index
    %c0_165 = arith.constant 0 : index
    %324 = vector.load %arg18[%c0_164, %c0_165] : memref<1x32xf32, #tpu.memory_space<vmem>>, vector<1x32xf32>
    %325 = vector.broadcast %324 : vector<1x32xf32> to vector<8x32xf32>
    %326 = arith.mulf %323, %325 : vector<8x32xf32>
    %cst_166 = arith.constant dense<0.000000e+00> : vector<8xf32>
    %327 = vector.multi_reduction <add>, %326, %cst_166 [1] : vector<8x32xf32> to vector<8xf32>
    %328 = vector.shape_cast %327 : vector<8xf32> to vector<8x1xf32>
    %c0_167 = arith.constant 0 : index
    %c0_168 = arith.constant 0 : index
    %329 = vector.load %arg19[%c0_167, %c0_168] : memref<1x1xf32, #tpu.memory_space<vmem>>, vector<1x1xf32>
    %330 = vector.broadcast %329 : vector<1x1xf32> to vector<8x1xf32>
    %331 = arith.addf %328, %330 : vector<8x1xf32>
    %c0_169 = arith.constant 0 : index
    %c0_170 = arith.constant 0 : index
    %332 = vector.load %arg22[%c0_169, %c0_170] : memref<8x1xf32, #tpu.memory_space<vmem>>, vector<8x1xf32>
    tpu.vector_store %arg22[%c0_169, %c0_170], %331 {strides = array<i32>} : memref<8x1xf32, #tpu.memory_space<vmem>>, vector<8x1xf32>,
    return
  }
  func.func @transform_0(%arg0: i32) -> (i32, i32) {
    %c0_i32 = arith.constant 0 : i32
    %c0_i32_0 = arith.constant 0 : i32
    return %arg0, %c0_i32 : i32, i32
  }
  func.func @transform_1(%arg0: i32) -> (i32, i32) {
    %c0_i32 = arith.constant 0 : i32
    %c0_i32_0 = arith.constant 0 : i32
    return %arg0, %c0_i32 : i32, i32
  }
  func.func @transform_2(%arg0: i32) -> (i32, i32) {
    %c0_i32 = arith.constant 0 : i32
    %c0_i32_0 = arith.constant 0 : i32
    %c0_i32_1 = arith.constant 0 : i32
    return %c0_i32, %c0_i32_0 : i32, i32
  }
  func.func @transform_3(%arg0: i32) -> (i32, i32) {
    %c0_i32 = arith.constant 0 : i32
    %c0_i32_0 = arith.constant 0 : i32
    %c0_i32_1 = arith.constant 0 : i32
    return %c0_i32, %c0_i32_0 : i32, i32
  }
  func.func @transform_4(%arg0: i32) -> (i32, i32) {
    %c0_i32 = arith.constant 0 : i32
    %c0_i32_0 = arith.constant 0 : i32
    %c0_i32_1 = arith.constant 0 : i32
    return %c0_i32, %c0_i32_0 : i32, i32
  }
  func.func @transform_5(%arg0: i32) -> (i32, i32) {
    %c0_i32 = arith.constant 0 : i32
    %c0_i32_0 = arith.constant 0 : i32
    %c0_i32_1 = arith.constant 0 : i32
    return %c0_i32, %c0_i32_0 : i32, i32
  }
  func.func @transform_6(%arg0: i32) -> (i32, i32, i32) {
    %c0_i32 = arith.constant 0 : i32
    %c0_i32_0 = arith.constant 0 : i32
    %c0_i32_1 = arith.constant 0 : i32
    %c0_i32_2 = arith.constant 0 : i32
    return %c0_i32, %c0_i32_0, %c0_i32_1 : i32, i32, i32
  }
  func.func @transform_7(%arg0: i32) -> (i32, i32, i32) {
    %c0_i32 = arith.constant 0 : i32
    %c0_i32_0 = arith.constant 0 : i32
    %c0_i32_1 = arith.constant 0 : i32
    %c0_i32_2 = arith.constant 0 : i32
    return %c0_i32, %c0_i32_0, %c0_i32_1 : i32, i32, i32
  }
  func.func @transform_8(%arg0: i32) -> (i32, i32, i32) {
    %c0_i32 = arith.constant 0 : i32
    %c0_i32_0 = arith.constant 0 : i32
    %c0_i32_1 = arith.constant 0 : i32
    %c0_i32_2 = arith.constant 0 : i32
    return %c0_i32, %c0_i32_0, %c0_i32_1 : i32, i32, i32
  }
  func.func @transform_9(%arg0: i32) -> (i32, i32, i32) {
    %c0_i32 = arith.constant 0 : i32
    %c0_i32_0 = arith.constant 0 : i32
    %c0_i32_1 = arith.constant 0 : i32
    %c0_i32_2 = arith.constant 0 : i32
    return %c0_i32, %c0_i32_0, %c0_i32_1 : i32, i32, i32
  }
  func.func @transform_10(%arg0: i32) -> (i32, i32, i32) {
    %c0_i32 = arith.constant 0 : i32
    %c0_i32_0 = arith.constant 0 : i32
    %c0_i32_1 = arith.constant 0 : i32
    %c0_i32_2 = arith.constant 0 : i32
    return %c0_i32, %c0_i32_0, %c0_i32_1 : i32, i32, i32
  }
  func.func @transform_11(%arg0: i32) -> (i32, i32, i32) {
    %c0_i32 = arith.constant 0 : i32
    %c0_i32_0 = arith.constant 0 : i32
    %c0_i32_1 = arith.constant 0 : i32
    %c0_i32_2 = arith.constant 0 : i32
    return %c0_i32, %c0_i32_0, %c0_i32_1 : i32, i32, i32
  }
  func.func @transform_12(%arg0: i32) -> (i32, i32, i32) {
    %c0_i32 = arith.constant 0 : i32
    %c0_i32_0 = arith.constant 0 : i32
    %c0_i32_1 = arith.constant 0 : i32
    %c0_i32_2 = arith.constant 0 : i32
    return %c0_i32, %c0_i32_0, %c0_i32_1 : i32, i32, i32
  }
  func.func @transform_13(%arg0: i32) -> (i32, i32, i32) {
    %c0_i32 = arith.constant 0 : i32
    %c0_i32_0 = arith.constant 0 : i32
    %c0_i32_1 = arith.constant 0 : i32
    %c0_i32_2 = arith.constant 0 : i32
    return %c0_i32, %c0_i32_0, %c0_i32_1 : i32, i32, i32
  }
  func.func @transform_14(%arg0: i32) -> (i32, i32, i32) {
    %c0_i32 = arith.constant 0 : i32
    %c0_i32_0 = arith.constant 0 : i32
    %c0_i32_1 = arith.constant 0 : i32
    %c0_i32_2 = arith.constant 0 : i32
    return %c0_i32, %c0_i32_0, %c0_i32_1 : i32, i32, i32
  }
  func.func @transform_15(%arg0: i32) -> (i32, i32) {
    %c0_i32 = arith.constant 0 : i32
    %c0_i32_0 = arith.constant 0 : i32
    %c0_i32_1 = arith.constant 0 : i32
    return %c0_i32, %c0_i32_0 : i32, i32
  }
  func.func @transform_16(%arg0: i32) -> (i32, i32) {
    %c0_i32 = arith.constant 0 : i32
    %c0_i32_0 = arith.constant 0 : i32
    %c0_i32_1 = arith.constant 0 : i32
    return %c0_i32, %c0_i32_0 : i32, i32
  }
  func.func @transform_17(%arg0: i32) -> (i32, i32) {
    %c0_i32 = arith.constant 0 : i32
    %c0_i32_0 = arith.constant 0 : i32
    %c0_i32_1 = arith.constant 0 : i32
    return %c0_i32, %c0_i32_0 : i32, i32
  }
  func.func @transform_18(%arg0: i32) -> (i32, i32) {
    %c0_i32 = arith.constant 0 : i32
    %c0_i32_0 = arith.constant 0 : i32
    %c0_i32_1 = arith.constant 0 : i32
    return %c0_i32, %c0_i32_0 : i32, i32
  }
  func.func @transform_19(%arg0: i32) -> (i32, i32) {
    %c0_i32 = arith.constant 0 : i32
    %c0_i32_0 = arith.constant 0 : i32
    %c0_i32_1 = arith.constant 0 : i32
    return %c0_i32, %c0_i32_0 : i32, i32
  }
  func.func @transform_20(%arg0: i32) -> (i32, i32) {
    %c0_i32 = arith.constant 0 : i32
    %c0_i32_0 = arith.constant 0 : i32
    %c0_i32_1 = arith.constant 0 : i32
    return %c0_i32, %c0_i32_0 : i32, i32
  }
  func.func @transform_21(%arg0: i32) -> (i32, i32) {
    %c0_i32 = arith.constant 0 : i32
    %c0_i32_0 = arith.constant 0 : i32
    return %arg0, %c0_i32 : i32, i32
  }
}

</mosaic_0001>

<bundles_post_ra>
// kernel: tab_transformer.1
= control target key start
LH: loop header
LB: loop body
LE: loop exit
PB: predicated region body
PF: predicated region fallthrough
CT: control target
= control target key end

     0   :  { %vm112_vm0 = vcmask 64512   ;;  %vm83_vm1 = vcmask 130048   ;;  %vm144_vm2 = vcmask 261120   ;;  %vm274_vm3 = vcmask 1043456   ;;  %s2323_s2 = inlined_call_operand.vmem [shape: f32[16,32], index: 2, kind: input, shape index: {}]   ;;  %s2324_s0 = inlined_call_operand.vmem [shape: f32[8,16], index: 0, kind: input, shape index: {}]   ;;  %s2325_s4 = inlined_call_operand.vmem [shape: f32[8,32], index: 4, kind: input, shape index: {}]   ;;  %s2326_s1 = inlined_call_operand.vmem [shape: f32[8,8], index: 1, kind: input, shape index: {}]   ;;  %s2327_s6 = inlined_call_operand.vmem [shape: f32[3,32,96], index: 6, kind: input, shape index: {}]   ;;  %s2328_s3 = inlined_call_operand.vmem [shape: f32[1,32], index: 3, kind: input, shape index: {}]   ;;  %s2329_s5 = inlined_call_operand.vmem [shape: f32[1,32], index: 5, kind: input, shape index: {}]   ;;  %s2330_s7 = inlined_call_operand.vmem [shape: f32[3,1,96], index: 7, kind: input, shape index: {}]   ;;  %s2331_s19 = inlined_call_operand.vmem [shape: f32[32,4], index: 19, kind: input, shape index: {}]   ;;  %s2332_s20 = inlined_call_operand.vmem [shape: f32[4,32], index: 20, kind: input, shape index: {}]   ;;  %s2333_s9 = inlined_call_operand.vmem [shape: f32[3,1,32], index: 9, kind: input, shape index: {}]   ;;  %s2334_s8 = inlined_call_operand.vmem [shape: f32[3,32,32], index: 8, kind: input, shape index: {}]   ;;  %s2335_s11 = inlined_call_operand.vmem [shape: f32[3,1,128], index: 11, kind: input, shape index: {}]   ;;  %s2336_s10 = inlined_call_operand.vmem [shape: f32[3,32,128], index: 10, kind: input, shape index: {}]   ;;  %s2337_s12 = inlined_call_operand.vmem [shape: f32[3,128,32], index: 12, kind: input, shape index: {}]   ;;  %s2338_s14 = inlined_call_operand.vmem [shape: f32[3,4,32], index: 14, kind: input, shape index: {}]   ;;  %s2339_s13 = inlined_call_operand.vmem [shape: f32[3,1,32], index: 13, kind: input, shape index: {}]   ;;  %s2340_s16 = inlined_call_operand.vmem [shape: f32[1,32], index: 16, kind: input, shape index: {}]   ;;  %s2341_s15 = inlined_call_operand.vmem [shape: f32[32,32], index: 15, kind: input, shape index: {}]   ;;  %s2342_s17 = inlined_call_operand.vmem [shape: f32[1,32], index: 17, kind: input, shape index: {}]   ;;  %s2343_s18 = inlined_call_operand.<no memory space> [shape: f32[1,1], index: 18, kind: input, shape index: {}]   ;;  %s2344_s21 = inlined_call_operand.vmem [shape: f32[8,1], index: 21, kind: output, shape index: {}]  }
   0x1   :  { %2347 = sst [smem:[#allocation3_spill]] %s2323_s2  ;;  %v1550_v12 = vld [vmem:[%s2329_s5] ss:$0 sm:$0xff]  ;;  %s1617_s5 = smov 32   ;;  %v1787_v22 = vld [vmem:[%s2331_s19 + $0x18] sm:$0xff]  ;;  %v1792_v23 = vld [vmem:[%s2331_s19 + $0x10] sm:$0xff] }
   0x2   :  { %2348 = sst [smem:[#allocation4_spill]] %s2324_s0  ;;  %v1551_v16 = vld [vmem:[%s2330_s7] ss:$0 sm:$0xff]  ;;  %218 = vmatpush.msra.mxu3 %v1787_v22  ;;  %v1798_v24 = vld [vmem:[%s2331_s19 + $0x8] sm:$0xff]  ;;  %vm267_vm7 = vcmask 31744  }
   0x3   :  { %2349 = sst [smem:[#allocation5_spill]] %s2325_s4  ;;  %s1616_s4 = smov 96   ;;  %v1809_v29 = vld [vmem:[%s2331_s19] sm:$0xff] }
   0x4   :  { %2350 = sst [smem:[#allocation6_spill]] %s2326_s1  ;;  %219 = vmatpush.msra.mxu3 %v1792_v23  ;;  %v1817_v34 = vld [vmem:[%s2332_s20] sm:$0xf] }
   0x5   :  { %2351 = sst [smem:[#allocation7_spill]] %s2327_s6  ;;  %s1618_s6 = smov 64  }
   0x6   :  { %2352 = sst [smem:[#allocation8_spill]] %s2328_s3  ;;  %220 = vmatpush.msra.mxu3 %v1798_v24 }
   0x7   :  { %s2353_s26 = sld [smem:[#allocation3_spill]] }
   0x8   :  { %s2354_s2 = sld [smem:[#allocation4_spill]]  ;;  %221 = vmatpush.msra.mxu3 %v1809_v29 }
   0x9   :  { %s2355_s3 = sld [smem:[#allocation5_spill]] }
   0xa   :  { %s2356_s0 = sld [smem:[#allocation6_spill]] }
   0xb   :  { %s2357_s25 = sld [smem:[#allocation7_spill]] }
   0xd   :  { %v78_v0 = vld [vmem:[%s2353_s26 + $0x8] sm:$0xff]  ;;  %v77_v1 = vld [vmem:[%s2353_s26] sm:$0xff] }
   0xe   :  { %v70_v2 = vld [vmem:[%s2354_s2] sm:$0xff]  ;;  %101 = vmatpush.msra.mxu0 %v78_v0 }
   0xf   :  { %v107_v3 = vld [vmem:[%s2355_s3] sm:$0xff]  ;;  %s2358_s3 = sld [smem:[#allocation8_spill]] }
  0x10   :  { %v71_v4 = vld [vmem:[%s2356_s0] sm:$0xff]  ;;  %131 = vmatpush.msra.mxu1 %v107_v3  ;;  %102 = vmatpush.msra.mxu0 %v77_v1 }
  0x11   :  { %v139_v5 = vld [vmem:[%s2357_s25 + $0x18] sm:$0xff]  ;;  %v138_v6 = vld [vmem:[%s2357_s25 + $0x10] sm:$0xff]  ;;  %1436 = vmatmul.msk.f32.vlgmr.msra.gmra.mxu1 %vm112_vm0, %v71_v4  ;;  %1435 = vmatmul.msk.f32.vlgmr.msra.gmra.mxu0 %vm83_vm1, %v70_v2  ;;  %v137_v7 = vld [vmem:[%s2357_s25 + $0x8] sm:$0xff] }
  0x12   :  { %163 = vmatpush.msra.mxu2 %v139_v5  ;;  %v136_v8 = vld [vmem:[%s2357_s25] sm:$0xff]  ;;  %1441 = vmatpush.msk.msrb.mxu1 %vm274_vm3, %v1817_v34 }
  0x14   :  { %164 = vmatpush.msra.mxu2 %v138_v6 }
  0x15   :  { %v1549_v9 = vld [vmem:[%s2358_s3] ss:$0 sm:$0xff] }
  0x16   :  { %165 = vmatpush.msra.mxu2 %v137_v7 }
  0x18   :  { %166 = vmatpush.msra.mxu2 %v136_v8 }
  0x8e   :  { %v104_v10 = vpop.f32.mrf.mxu0  ;;  %v133_v13 = vpop.f32.mrf.mxu1 }
  0x8f   :  { %v1760_v11 = vadd.f32 %v1549_v9, %v104_v10  ;;  %v1767_v14 = vadd.f32 %v1550_v12, %v133_v13  ;;  %v322_v9 = vld [vmem:[%s2334_s8 + $0x18] sm:$0xff]  ;;  %v321_v10 = vld [vmem:[%s2334_s8 + $0x10] sm:$0xff]  ;;  %v320_v12 = vld [vmem:[%s2334_s8 + $0x8] sm:$0xff] }
  0x90   :  { %349 = vmatpush.msrb.mxu0 %v322_v9  ;;  %1537 = vmatpush.msra.mxu1 %v322_v9  ;;  %v319_v13 = vld [vmem:[%s2334_s8] sm:$0xff]  ;;  %v466_v9 = vld [vmem:[%s2337_s12 + $0x38] sm:$0xff] }
  0x91   :  { %1437 = vmatmul.msk.f32.vlgmr.msra.gmra.mxu2 %vm144_vm2, %v1760_v11 }
  0x92   :  { %350 = vmatpush.msrb.mxu0 %v321_v10  ;;  %1538 = vmatpush.msra.mxu1 %v321_v10 }
  0x94   :  { %351 = vmatpush.msrb.mxu0 %v320_v12  ;;  %1539 = vmatpush.msra.mxu1 %v320_v12 }
  0x96   :  { %352 = vmatpush.msrb.mxu0 %v319_v13  ;;  %1540 = vmatpush.msra.mxu1 %v319_v13 }
  0x98   :  { %637 = vmatpush.msra.mxu0 %v1787_v22 }
  0x99   :  { %1438 = vmatmul.msk.f32.gmra.mxu2 %vm144_vm2, %v1767_v14 }
  0x9a   :  { %638 = vmatpush.msra.mxu0 %v1792_v23 }
  0x9c   :  { %639 = vmatpush.msra.mxu0 %v1798_v24 }
  0x9e   :  { %640 = vmatpush.msra.mxu0 %v1809_v29 }
 0x114   :  { %v168_v15 = vpop.f32.mrf.mxu2 }
 0x115   :  { %v169_v19 = vadd.f32 %v1551_v16, %v168_v15 }
 0x11c   :  { %v171_v17 = vpop.f32.mrf.mxu2 }
 0x11d   :  { %v172_v18 = vadd.f32 %v1551_v16, %v171_v17 }
 0x11f   :  { %178 = vrot.lane.b32.xlu0 %v172_v18, %s1616_s4 }
 0x127   :  { %176 = vrot.lane.b32.xlu0 %v169_v19, %s1616_s4 }
 0x191   :  { %v1776_v20 = vpop.permute.xlu0 %178 }
 0x192   :  { %182 = vrot.lane.b32.xlu1 %v1776_v20, %s1617_s5 }
 0x199   :  { %v1780_v21 = vpop.permute.xlu0 %176 }
 0x19a   :  { %184 = vrot.lane.b32.xlu1 %v1780_v21, %s1617_s5 }
 0x204   :  { %v183_v25 = vpop.permute.xlu1 %182 }
 0x205   :  { %v188_v26 = vsub.f32 %v169_v19, %v183_v25 }
 0x207   :  { %301 = vrot.lane.b32.xlu0 %v188_v26, %s1618_s6  ;;  %192 = vrot.lane.b32.xlu2 %v188_v26, %s1616_s4 }
 0x20c   :  { %v185_v27 = vpop.permute.xlu1 %184 }
 0x20d   :  { %v189_v28 = vsub.f32 %v172_v18, %v185_v27 }
 0x20f   :  { %303 = vrot.lane.b32.xlu1 %v189_v28, %s1618_s6  ;;  %194 = vrot.lane.b32.xlu2 %v189_v28, %s1616_s4 }
 0x261   :  { %v193_v30 = vpop.permute.xlu2 %192 }
 0x262   :  { %v198_v31 = vmul.f32 %v193_v30, %v169_v19  ;;  %v1552_v19 = vld [vmem:[%s2333_s9] ss:$0 sm:$0xff] }
 0x264   :  { %1439 = vmatmul.msk.f32.vlgmr.msra.gmra.mxu3 %vm144_vm2, %v198_v31 }
 0x269   :  { %v195_v32 = vpop.permute.xlu2 %194 }
 0x26a   :  { %v199_v33 = vmul.f32 %v195_v32, %v172_v18  ;;  %v1619_v32 = vmov 32.0  }
 0x26c   :  { %1440 = vmatmul.msk.f32.gmra.mxu3 %vm144_vm2, %v199_v33 }
 0x279   :  { %v302_v1 = vpop.permute.xlu0 %301 }
 0x281   :  { %v304_v4 = vpop.permute.xlu1 %303 }
 0x2e7   :  { %v223_v35 = vpop.f32.mrf.mxu3 }
 0x2e8   :  { %v229_v36 = vsub.f32 0.0, %v223_v35 }
 0x2ea   :  { %v231_v37 = vmul.f32 1.442695, %v229_v36 }
 0x2ec   :  { %1566 = vpow2.f32 %v231_v37 }
 0x2ef   :  { %v226_v38 = vpop.f32.mrf.mxu3 }
 0x2f0   :  { %v230_v39 = vsub.f32 0.0, %v226_v38 }
 0x2f2   :  { %v1567_v40 = vpop.eup %1566  ;;  %v233_v41 = vmul.f32 1.442695, %v230_v39 }
 0x2f3   :  { %v235_v42 = vadd.f32 1.0, %v1567_v40 }
 0x2f4   :  { %1568 = vpow2.f32 %v233_v41 }
 0x2f5   :  { %1570 = vrcp.f32 %v235_v42  ;;  %v248_v48 = vand.u32 2147483648, %v235_v42  ;;  %v246_v50 = vand.u32 2147483647, %v235_v42  ;;  %vm242_vm5 = vweird.f32 %v235_v42 }
 0x2f7   :  { %v249_v53 = vor.u32 1.1754944e-38, %v248_v48  ;;  %vm247_vm8 = vcmp.eq.f32.partialorder %v246_v50, 8.507059e+37  ;;  %v423_v48 = vld [vmem:[%s2336_s10 + $0x18] sm:$0xff]  ;;  %v421_v50 = vld [vmem:[%s2336_s10 + $0x8] sm:$0xff] }
 0x2f8   :  { %446 = vmatpush.msrb.mxu2 %v423_v48 }
 0x2fa   :  { %v1569_v43 = vpop.eup %1568 }
 0x2fb   :  { %v1571_v44 = vpop.eup %1570  ;;  %v236_v45 = vadd.f32 1.0, %v1569_v43 }
 0x2fc   :  { %v238_v46 = vmul.f32 %v1571_v44, %v235_v42  ;;  %vm243_vm4 = vweird.f32 %v1571_v44 }
 0x2fd   :  { %1572 = vrcp.f32 %v236_v45  ;;  %vm244_vm6 = vmor %vm242_vm5, %vm243_vm4  ;;  %v263_v58 = vand.u32 2147483648, %v236_v45  ;;  %v261_v60 = vand.u32 2147483647, %v236_v45  ;;  %vm257_vm10 = vweird.f32 %v236_v45 }
 0x2fe   :  { %v239_v47 = vsub.f32 1.0, %v238_v46  ;;  %1574 = vrcp.f32 %v1619_v32 }
 0x2ff   :  { %v264_v62 = vor.u32 1.1754944e-38, %v263_v58  ;;  %vm262_vm12 = vcmp.eq.f32.partialorder %v261_v60, 8.507059e+37  ;;  %v471_v60 = vld [vmem:[%s2337_s12 + $0x60] sm:$0xff] }
 0x300   :  { %v240_v49 = vmul.f32 %v1571_v44, %v239_v47 }
 0x302   :  { %v241_v51 = vadd.f32 %v1571_v44, %v240_v49  ;;  %v422_v49 = vld [vmem:[%s2336_s10 + $0x10] sm:$0xff] }
 0x303   :  { %v1573_v52 = vpop.eup %1572  ;;  %447 = vmatpush.msrb.mxu2 %v422_v49 }
 0x304   :  { %v245_v54 = vsel %vm244_vm6, %v1571_v44, %v241_v51  ;;  %v253_v55 = vmul.f32 %v1573_v52, %v236_v45  ;;  %vm258_vm9 = vweird.f32 %v1573_v52  ;;  %v1575_v33 = vpop.eup %1574  ;;  %v420_v51 = vld [vmem:[%s2336_s10] sm:$0xff] }
 0x305   :  { %v250_v56 = vsel %vm247_vm8, %v249_v53, %v245_v54  ;;  %vm259_vm11 = vmor %vm257_vm10, %vm258_vm9  ;;  %v370_v35 = vmul.f32 32.0, %v1575_v33  ;;  %vm374_vm13 = vweird.f32 %v1575_v33  ;;  %448 = vmatpush.msrb.mxu2 %v421_v50 }
 0x306   :  { %1442 = vmatmul.msk.f32.vlgmr.msrb.gmra.mxu1 %vm267_vm7, %v250_v56  ;;  %v254_v57 = vsub.f32 1.0, %v253_v55  ;;  %v474_v55 = vld [vmem:[%s2337_s12 + $0x78] sm:$0xff]  ;;  %v473_v56 = vld [vmem:[%s2337_s12 + $0x70] sm:$0xff] }
 0x307   :  { %v371_v36 = vsub.f32 1.0, %v370_v35  ;;  %449 = vmatpush.msrb.mxu2 %v420_v51  ;;  %479 = vmatpush.msrb.mxu3 %v474_v55 }
 0x308   :  { %v255_v59 = vmul.f32 %v1573_v52, %v254_v57  ;;  %v472_v57 = vld [vmem:[%s2337_s12 + $0x68] sm:$0xff] }
 0x309   :  { %v372_v37 = vmul.f32 %v1575_v33, %v371_v36  ;;  %1457 = vmatpush.msk.msra.mxu2 %vm274_vm3, %v1817_v34  ;;  %480 = vmatpush.msrb.mxu3 %v473_v56 }
 0x30a   :  { %v256_v61 = vadd.f32 %v1573_v52, %v255_v59 }
 0x30b   :  { %v373_v38 = vadd.f32 %v1575_v33, %v372_v37  ;;  %481 = vmatpush.msrb.mxu3 %v472_v57  ;;  %v461_v37 = vld [vmem:[%s2337_s12 + $0x10] sm:$0xff] }
 0x30c   :  { %v260_v63 = vsel %vm259_vm11, %v1573_v52, %v256_v61 }
 0x30d   :  { %v265_v0 = vsel %vm262_vm12, %v264_v62, %v260_v63  ;;  %v1854_v39 = vsel %vm374_vm13, %v1575_v33, %v373_v38  ;;  %v470_v63 = vld [vmem:[%s2337_s12 + $0x58] sm:$0xff]  ;;  %482 = vmatpush.msrb.mxu3 %v471_v60  ;;  %v460_v38 = vld [vmem:[%s2337_s12 + $0x8] sm:$0xff] }
 0x30e   :  { %1443 = vmatmul.msk.f32.gmra.mxu1 %vm267_vm7, %v265_v0 }
 0x30f   :  { %483 = vmatpush.msrb.mxu3 %v470_v63 }
 0x383   :  { %v295_v2 = vpop.f32.mrf.mxu1 }
 0x384   :  { %v307_v3 = vmul.f32 %v302_v1, %v295_v2  ;;  %v469_v1 = vld [vmem:[%s2337_s12 + $0x50] sm:$0xff] }
 0x385   :  { %484 = vmatpush.msrb.mxu3 %v469_v1  ;;  %v1451_v1 = vld [vmem:[%s2357_s25 + $0x38] sm:$0xff] }
 0x386   :  { %311 = vrot.lane.b32.xlu2 %v307_v3, %s1617_s5  ;;  %v468_v3 = vld [vmem:[%s2337_s12 + $0x48] sm:$0xff]  ;;  %582 = vmatpush.msrb.mxu1 %v1451_v1 }
 0x387   :  { %485 = vmatpush.msrb.mxu3 %v468_v3  ;;  %v1449_v3 = vld [vmem:[%s2357_s25 + $0x28] sm:$0xff] }
 0x38b   :  { %v298_v5 = vpop.f32.mrf.mxu1 }
 0x38c   :  { %v308_v6 = vmul.f32 %v304_v4, %v298_v5  ;;  %v467_v5 = vld [vmem:[%s2337_s12 + $0x40] sm:$0xff] }
 0x38d   :  { %486 = vmatpush.msrb.mxu3 %v467_v5 }
 0x38e   :  { %313 = vrot.lane.b32.xlu0 %v308_v6, %s1617_s5 }
 0x38f   :  { %487 = vmatpush.msrb.mxu3 %v466_v9 }
 0x3e0   :  { %v312_v7 = vpop.permute.xlu2 %311 }
 0x3e1   :  { %v317_v8 = vadd.f32 %v312_v7, %v1776_v20  ;;  %v1911_v7 = vld [vmem:[%s2338_s14] sm:$0xf] }
 0x3e2   :  { %v414_v13 = vperm.slane %v1911_v7, 0 }
 0x3e3   :  { %329 = vrot.lane.b32.xlu1 %v317_v8, %s1616_s4 }
 0x400   :  { %v314_v15 = vpop.permute.xlu0 %313 }
 0x401   :  { %v318_v16 = vadd.f32 %v314_v15, %v1780_v21  ;;  %v465_v15 = vld [vmem:[%s2337_s12 + $0x30] sm:$0xff] }
 0x402   :  { %488 = vmatpush.msrb.mxu3 %v465_v15 }
 0x403   :  { %331 = vrot.lane.b32.xlu2 %v318_v16, %s1616_s4 }
 0x455   :  { %v330_v17 = vpop.permute.xlu1 %329 }
 0x456   :  { %1444 = vmatmul.msk.f32.vlgmr.msrb.gmra.mxu0 %vm144_vm2, %v330_v17 }
 0x45d   :  { %v332_v18 = vpop.permute.xlu2 %331 }
 0x45e   :  { %1445 = vmatmul.msk.f32.vlgmr.msra.gmra.mxu1 %vm144_vm2, %v332_v18 }
 0x4d3   :  { %v354_v20 = vpop.f32.mrf.mxu0 }
 0x4d4   :  { %v355_v25 = vadd.f32 %v1552_v19, %v354_v20  ;;  %v464_v20 = vld [vmem:[%s2337_s12 + $0x28] sm:$0xff] }
 0x4d5   :  { %489 = vmatpush.msrb.mxu3 %v464_v20 }
 0x4d6   :  { %v361_v26 = vadd.f32 %v355_v25, %v1760_v11 }
 0x4d8   :  { %v363_v27 = vsel %vm144_vm2, %v361_v26, 0.0 }
 0x4d9   :  { %364 = vadd.xlane.f32.xlu0 %v363_v27  ;;  %v463_v27 = vld [vmem:[%s2337_s12 + $0x20] sm:$0xff] }
 0x4da   :  { %490 = vmatpush.msrb.mxu3 %v463_v27 }
 0x4db   :  { %v357_v21 = vpop.f32.mrf.mxu1 }
 0x4dc   :  { %v358_v28 = vadd.f32 %v1552_v19, %v357_v21  ;;  %v417_v19 = vperm.slane %v1911_v7, 1 }
 0x4de   :  { %v362_v30 = vadd.f32 %v358_v28, %v1767_v14 }
 0x4e0   :  { %v366_v31 = vsel %vm144_vm2, %v362_v30, 0.0 }
 0x4e1   :  { %367 = vadd.xlane.f32.xlu1 %v366_v31 }
 0x54c   :  { %v365_v11 = vpop.xlane.xlu0 %364 }
 0x54d   :  { %v376_v40 = vmul.f32 %v1854_v39, %v365_v11  ;;  %v459_v11 = vld [vmem:[%s2337_s12] sm:$0xff] }
 0x54f   :  { %v1857_v41 = vsub.f32 %v361_v26, %v376_v40  ;;  %v1553_v40 = vld [vmem:[%s2335_s11] ss:$0 sm:$0xff] }
 0x551   :  { %v380_v14 = vmul.f32 %v1857_v41, %v1857_v41 }
 0x553   :  { %v382_v42 = vsel %vm144_vm2, %v380_v14, 0.0 }
 0x554   :  { %383 = vadd.xlane.f32.xlu2 %v382_v42  ;;  %v368_v43 = vpop.xlane.xlu1 %367 }
 0x555   :  { %v377_v44 = vmul.f32 %v1854_v39, %v368_v43 }
 0x557   :  { %v1863_v45 = vsub.f32 %v362_v30, %v377_v44  ;;  %v462_v30 = vld [vmem:[%s2337_s12 + $0x18] sm:$0xff] }
 0x558   :  { %491 = vmatpush.msrb.mxu3 %v462_v30  ;;  %v551_v30 = vperm.slane %v1911_v7, 3 }
 0x559   :  { %v381_v46 = vmul.f32 %v1863_v45, %v1863_v45 }
 0x55a   :  { %492 = vmatpush.msrb.mxu3 %v461_v37 }
 0x55b   :  { %v385_v47 = vsel %vm144_vm2, %v381_v46, 0.0  ;;  %v1554_v46 = vld [vmem:[%s2339_s13] ss:$0 sm:$0xff] }
 0x55c   :  { %386 = vadd.xlane.f32.xlu2 %v385_v47  ;;  %493 = vmatpush.msrb.mxu3 %v460_v38 }
 0x55e   :  { %494 = vmatpush.msrb.mxu3 %v459_v11 }
 0x560   :  { %1541 = vmatpush.msra.mxu3 %v1787_v22 }
 0x562   :  { %1542 = vmatpush.msra.mxu3 %v1792_v23 }
 0x564   :  { %1543 = vmatpush.msra.mxu3 %v1798_v24 }
 0x566   :  { %1544 = vmatpush.msra.mxu3 %v1809_v29 }
 0x5c7   :  { %v384_v52 = vpop.xlane.xlu2 %383 }
 0x5c8   :  { %v388_v53 = vmul.f32 %v384_v52, %v1854_v39 }
 0x5ca   :  { %v390_v54 = vadd.f32 1e-05, %v388_v53 }
 0x5cc   :  { %1576 = vrsqrt.f32 %v390_v54  ;;  %vm398_vm15 = vweird.f32 %v390_v54 }
 0x5cf   :  { %v387_v58 = vpop.xlane.xlu2 %386 }
 0x5d0   :  { %v389_v59 = vmul.f32 %v387_v58, %v1854_v39 }
 0x5d2   :  { %v1577_v61 = vpop.eup %1576  ;;  %v391_v62 = vadd.f32 1e-05, %v389_v59 }
 0x5d3   :  { %v393_v0 = vmul.f32 %v1577_v61, %v390_v54  ;;  %vm399_vm14 = vweird.f32 %v1577_v61 }
 0x5d4   :  { %1578 = vrsqrt.f32 %v391_v62  ;;  %vm400_vm0 = vmor %vm398_vm15, %vm399_vm14  ;;  %vm408_vm4 = vweird.f32 %v391_v62 }
 0x5d5   :  { %v394_v2 = vmul.f32 %v1577_v61, %v393_v0 }
 0x5d7   :  { %v395_v4 = vmul.f32 0.5, %v394_v2  ;;  %v1450_v2 = vld [vmem:[%s2357_s25 + $0x30] sm:$0xff] }
 0x5d8   :  { %583 = vmatpush.msrb.mxu1 %v1450_v2 }
 0x5d9   :  { %v396_v6 = vsub.f32 1.5, %v395_v4  ;;  %v1448_v4 = vld [vmem:[%s2357_s25 + $0x20] sm:$0xff] }
 0x5da   :  { %v1579_v8 = vpop.eup %1578  ;;  %584 = vmatpush.msrb.mxu1 %v1449_v3 }
 0x5db   :  { %v397_v10 = vmul.f32 %v1577_v61, %v396_v6  ;;  %v403_v12 = vmul.f32 %v1579_v8, %v391_v62  ;;  %vm409_vm1 = vweird.f32 %v1579_v8 }
 0x5dc   :  { %vm410_vm5 = vmor %vm408_vm4, %vm409_vm1  ;;  %585 = vmatpush.msrb.mxu1 %v1448_v4 }
 0x5dd   :  { %v401_v16 = vsel %vm400_vm0, %v1577_v61, %v397_v10  ;;  %v404_v17 = vmul.f32 %v1579_v8, %v403_v12 }
 0x5de   :  { %v412_v18 = vmul.f32 %v401_v16, %v1857_v41 }
 0x5df   :  { %v405_v25 = vmul.f32 0.5, %v404_v17 }
 0x5e0   :  { %v415_v26 = vmul.f32 %v414_v13, %v412_v18 }
 0x5e1   :  { %v406_v21 = vsub.f32 1.5, %v405_v25 }
 0x5e2   :  { %v418_v28 = vadd.f32 %v417_v19, %v415_v26  ;;  %v548_v26 = vperm.slane %v1911_v7, 2  ;;  %v1555_v7 = vld [vmem:[%s2330_s7 + $0x1] ss:$0 sm:$0xff] }
 0x5e3   :  { %v407_v31 = vmul.f32 %v1579_v8, %v406_v21 }
 0x5e4   :  { %1446 = vmatmul.msk.f32.vlgmr.msrb.gmra.mxu2 %vm144_vm2, %v418_v28 }
 0x5e5   :  { %v411_v32 = vsel %vm410_vm5, %v1579_v8, %v407_v31 }
 0x5e6   :  { %v413_v33 = vmul.f32 %v411_v32, %v1863_v45 }
 0x5e8   :  { %v416_v35 = vmul.f32 %v414_v13, %v413_v33 }
 0x5ea   :  { %v419_v36 = vadd.f32 %v417_v19, %v416_v35 }
 0x5ec   :  { %1447 = vmatmul.msk.f32.gmra.mxu2 %vm144_vm2, %v419_v36 }
 0x667   :  { %v451_v41 = vpop.f32.mrf.mxu2 }
 0x668   :  { %v452_v14 = vadd.f32 %v1553_v40, %v451_v41 }
 0x66a   :  { %v457_v42 = vmax.f32 %v452_v14, 0.0 }
 0x66c   :  { %495 = vmatmul.f32.vlgmr.msrb.gmra.mxu3 %v457_v42 }
 0x66f   :  { %v454_v43 = vpop.f32.mrf.mxu2 }
 0x670   :  { %v455_v44 = vadd.f32 %v1553_v40, %v454_v43 }
 0x672   :  { %v458_v45 = vmax.f32 %v455_v44, 0.0 }
 0x674   :  { %498 = vmatmul.f32.gmra.mxu3 %v458_v45 }
 0x6ef   :  { %v496_v47 = vpop.f32.mrf.mxu3 }
 0x6f0   :  { %v497_v48 = vadd.f32 %v1554_v46, %v496_v47 }
 0x6f2   :  { %v502_v49 = vadd.f32 %v497_v48, %v418_v28 }
 0x6f4   :  { %v504_v50 = vsel %vm144_vm2, %v502_v49, 0.0 }
 0x6f5   :  { %505 = vadd.xlane.f32.xlu0 %v504_v50 }
 0x6f7   :  { %v499_v51 = vpop.f32.mrf.mxu3 }
 0x6f8   :  { %v500_v52 = vadd.f32 %v1554_v46, %v499_v51 }
 0x6fa   :  { %v503_v53 = vadd.f32 %v500_v52, %v419_v36 }
 0x6fc   :  { %v507_v54 = vsel %vm144_vm2, %v503_v53, 0.0 }
 0x6fd   :  { %508 = vadd.xlane.f32.xlu1 %v507_v54 }
 0x768   :  { %v506_v55 = vpop.xlane.xlu0 %505 }
 0x769   :  { %v510_v56 = vmul.f32 %v506_v55, %v1854_v39 }
 0x76b   :  { %v512_v57 = vsub.f32 %v502_v49, %v510_v56 }
 0x76d   :  { %v514_v58 = vmul.f32 %v512_v57, %v512_v57 }
 0x76f   :  { %v516_v59 = vsel %vm144_vm2, %v514_v58, 0.0 }
 0x770   :  { %517 = vadd.xlane.f32.xlu2 %v516_v59  ;;  %v509_v60 = vpop.xlane.xlu1 %508 }
 0x771   :  { %v511_v61 = vmul.f32 %v509_v60, %v1854_v39 }
 0x773   :  { %v513_v62 = vsub.f32 %v503_v53, %v511_v61 }
 0x775   :  { %v515_v63 = vmul.f32 %v513_v62, %v513_v62 }
 0x777   :  { %v519_v0 = vsel %vm144_vm2, %v515_v63, 0.0 }
 0x778   :  { %520 = vadd.xlane.f32.xlu0 %v519_v0 }
 0x7e3   :  { %v518_v5 = vpop.xlane.xlu2 %517 }
 0x7e4   :  { %v522_v6 = vmul.f32 %v518_v5, %v1854_v39 }
 0x7e6   :  { %v524_v8 = vadd.f32 1e-05, %v522_v6 }
 0x7e8   :  { %1580 = vrsqrt.f32 %v524_v8  ;;  %vm532_vm8 = vweird.f32 %v524_v8 }
 0x7eb   :  { %v521_v9 = vpop.xlane.xlu0 %520 }
 0x7ec   :  { %v523_v10 = vmul.f32 %v521_v9, %v1854_v39 }
 0x7ee   :  { %v1581_v12 = vpop.eup %1580  ;;  %v525_v13 = vadd.f32 1e-05, %v523_v10 }
 0x7ef   :  { %v527_v15 = vmul.f32 %v1581_v12, %v524_v8  ;;  %vm533_vm6 = vweird.f32 %v1581_v12 }
 0x7f0   :  { %1582 = vrsqrt.f32 %v525_v13  ;;  %vm534_vm9 = vmor %vm532_vm8, %vm533_vm6  ;;  %vm542_vm11 = vweird.f32 %v525_v13 }
 0x7f1   :  { %v528_v16 = vmul.f32 %v1581_v12, %v527_v15 }
 0x7f3   :  { %v529_v17 = vmul.f32 0.5, %v528_v16 }
 0x7f5   :  { %v530_v18 = vsub.f32 1.5, %v529_v17 }
 0x7f6   :  { %v1583_v19 = vpop.eup %1582 }
 0x7f7   :  { %v531_v20 = vmul.f32 %v1581_v12, %v530_v18  ;;  %v537_v25 = vmul.f32 %v1583_v19, %v525_v13  ;;  %vm543_vm10 = vweird.f32 %v1583_v19 }
 0x7f8   :  { %vm544_vm12 = vmor %vm542_vm11, %vm543_vm10 }
 0x7f9   :  { %v535_v27 = vsel %vm534_vm9, %v1581_v12, %v531_v20  ;;  %v538_v21 = vmul.f32 %v1583_v19, %v537_v25 }
 0x7fa   :  { %v546_v28 = vmul.f32 %v535_v27, %v512_v57 }
 0x7fb   :  { %v539_v31 = vmul.f32 0.5, %v538_v21 }
 0x7fc   :  { %v549_v32 = vmul.f32 %v548_v26, %v546_v28 }
 0x7fd   :  { %v540_v33 = vsub.f32 1.5, %v539_v31 }
 0x7fe   :  { %v1975_v35 = vadd.f32 %v551_v30, %v549_v32 }
 0x7ff   :  { %v541_v36 = vmul.f32 %v1583_v19, %v540_v33 }
 0x800   :  { %1453 = vmatmul.msk.f32.vlgmr.msrb.gmra.mxu1 %vm144_vm2, %v1975_v35 }
 0x801   :  { %v545_v37 = vsel %vm544_vm12, %v1583_v19, %v541_v36 }
 0x802   :  { %v547_v38 = vmul.f32 %v545_v37, %v513_v62  ;;  %v1463_v37 = vld [vmem:[%s2334_s8 + $0x38] sm:$0xff] }
 0x803   :  { %765 = vmatpush.msra.mxu1 %v1463_v37 }
 0x804   :  { %v550_v11 = vmul.f32 %v548_v26, %v547_v38  ;;  %v1462_v38 = vld [vmem:[%s2334_s8 + $0x30] sm:$0xff] }
 0x805   :  { %766 = vmatpush.msra.mxu1 %v1462_v38  ;;  %v1479_v38 = vld [vmem:[%s2337_s12 + $0xa0] sm:$0xff] }
 0x806   :  { %v1979_v40 = vadd.f32 %v551_v30, %v550_v11  ;;  %v1461_v11 = vld [vmem:[%s2334_s8 + $0x28] sm:$0xff] }
 0x807   :  { %767 = vmatpush.msra.mxu1 %v1461_v11 }
 0x808   :  { %1454 = vmatmul.msk.f32.gmra.mxu1 %vm144_vm2, %v1979_v40 }
 0x87d   :  { %v587_v41 = vpop.f32.mrf.mxu1 }
 0x87e   :  { %v588_v14 = vadd.f32 %v1555_v7, %v587_v41 }
 0x880   :  { %595 = vrot.lane.b32.xlu2 %v588_v14, %s1616_s4 }
 0x885   :  { %v590_v42 = vpop.f32.mrf.mxu1 }
 0x886   :  { %v591_v43 = vadd.f32 %v1555_v7, %v590_v42  ;;  %v1460_v7 = vld [vmem:[%s2334_s8 + $0x20] sm:$0xff] }
 0x887   :  { %768 = vmatpush.msra.mxu1 %v1460_v7 }
 0x888   :  { %597 = vrot.lane.b32.xlu1 %v591_v43, %s1616_s4 }
 0x889   :  { %1051 = vmatpush.msrb.mxu1 %v1787_v22  ;;  %v1556_v22 = vld [vmem:[%s2333_s9 + $0x1] ss:$0 sm:$0xff] }
 0x88b   :  { %1052 = vmatpush.msrb.mxu1 %v1792_v23 }
 0x88d   :  { %1053 = vmatpush.msrb.mxu1 %v1798_v24 }
 0x88f   :  { %1054 = vmatpush.msrb.mxu1 %v1809_v29 }
 0x8da   :  { %v1988_v44 = vpop.permute.xlu2 %595 }
 0x8db   :  { %603 = vrot.lane.b32.xlu1 %v1988_v44, %s1617_s5 }
 0x8fa   :  { %v1992_v45 = vpop.permute.xlu1 %597 }
 0x8fb   :  { %601 = vrot.lane.b32.xlu0 %v1992_v45, %s1617_s5 }
 0x94d   :  { %v604_v46 = vpop.permute.xlu1 %603 }
 0x94e   :  { %v608_v47 = vsub.f32 %v591_v43, %v604_v46 }
 0x950   :  { %613 = vrot.lane.b32.xlu2 %v608_v47, %s1616_s4 }
 0x96d   :  { %v602_v48 = vpop.permute.xlu0 %601 }
 0x96e   :  { %v607_v49 = vsub.f32 %v588_v14, %v602_v48 }
 0x970   :  { %715 = vrot.lane.b32.xlu1 %v607_v49, %s1618_s6  ;;  %611 = vrot.lane.b32.xlu0 %v607_v49, %s1616_s4 }
 0x978   :  { %717 = vrot.lane.b32.xlu0 %v608_v47, %s1618_s6 }
 0x9aa   :  { %v614_v50 = vpop.permute.xlu2 %613 }
 0x9ab   :  { %v618_v51 = vmul.f32 %v614_v50, %v591_v43 }
 0x9ad   :  { %1456 = vmatmul.msk.f32.vlgmr.msra.gmra.mxu3 %vm144_vm2, %v618_v51 }
 0x9e2   :  { %v612_v52 = vpop.permute.xlu0 %611  ;;  %v716_v27 = vpop.permute.xlu1 %715 }
 0x9e3   :  { %v617_v53 = vmul.f32 %v612_v52, %v588_v14 }
 0x9e5   :  { %1455 = vmatmul.msk.f32.vlgmr.msra.gmra.mxu0 %vm144_vm2, %v617_v53 }
 0x9ea   :  { %v718_v30 = vpop.permute.xlu0 %717 }
 0xa30   :  { %v645_v54 = vpop.f32.mrf.mxu3 }
 0xa31   :  { %v649_v55 = vsub.f32 0.0, %v645_v54 }
 0xa33   :  { %v652_v56 = vmul.f32 1.442695, %v649_v55 }
 0xa35   :  { %1584 = vpow2.f32 %v652_v56 }
 0xa3b   :  { %v1585_v59 = vpop.eup %1584 }
 0xa3c   :  { %v655_v61 = vadd.f32 1.0, %v1585_v59  ;;  %v1469_v59 = vld [vmem:[%s2336_s10 + $0x28] sm:$0xff] }
 0xa3e   :  { %v682_v18 = vand.u32 2147483648, %v655_v61  ;;  %vm676_vm4 = vweird.f32 %v655_v61  ;;  %v680_v19 = vand.u32 2147483647, %v655_v61 }
 0xa40   :  { %v683_v25 = vor.u32 1.1754944e-38, %v682_v18  ;;  %vm681_vm6 = vcmp.eq.f32.partialorder %v680_v19, 8.507059e+37 }
 0xa62   :  { %v642_v57 = vpop.f32.mrf.mxu0 }
 0xa63   :  { %v648_v58 = vsub.f32 0.0, %v642_v57  ;;  %v1471_v57 = vld [vmem:[%s2336_s10 + $0x38] sm:$0xff] }
 0xa64   :  { %858 = vmatpush.msrb.mxu0 %v1471_v57 }
 0xa65   :  { %v650_v60 = vmul.f32 1.442695, %v648_v58  ;;  %v1470_v58 = vld [vmem:[%s2336_s10 + $0x30] sm:$0xff] }
 0xa66   :  { %859 = vmatpush.msrb.mxu0 %v1470_v58 }
 0xa67   :  { %1586 = vpow2.f32 %v650_v60  ;;  %v1468_v60 = vld [vmem:[%s2336_s10 + $0x20] sm:$0xff] }
 0xa68   :  { %1588 = vrcp.f32 %v655_v61  ;;  %860 = vmatpush.msrb.mxu0 %v1469_v59 }
 0xa6a   :  { %861 = vmatpush.msrb.mxu0 %v1468_v60 }
 0xa6c   :  { %1501 = vmatpush.msk.msra.mxu0 %vm274_vm3, %v1817_v34 }
 0xa6d   :  { %v1587_v62 = vpop.eup %1586 }
 0xa6e   :  { %v654_v63 = vadd.f32 1.0, %v1587_v62  ;;  %v1589_v0 = vpop.eup %1588 }
 0xa6f   :  { %v672_v1 = vmul.f32 %v1589_v0, %v655_v61  ;;  %vm677_vm1 = vweird.f32 %v1589_v0 }
 0xa70   :  { %1590 = vrcp.f32 %v654_v63  ;;  %v667_v6 = vand.u32 2147483648, %v654_v63  ;;  %v665_v9 = vand.u32 2147483647, %v654_v63  ;;  %vm661_vm14 = vweird.f32 %v654_v63  ;;  %vm678_vm5 = vmor %vm676_vm4, %vm677_vm1 }
 0xa71   :  { %v673_v5 = vsub.f32 1.0, %v672_v1  ;;  %v1489_v1 = vld [vmem:[%s2337_s12 + $0xf0] sm:$0xff] }
 0xa72   :  { %v668_v13 = vor.u32 1.1754944e-38, %v667_v6  ;;  %vm666_vm0 = vcmp.eq.f32.partialorder %v665_v9, 8.507059e+37 }
 0xa73   :  { %v674_v12 = vmul.f32 %v1589_v0, %v673_v5 }
 0xa75   :  { %v675_v17 = vadd.f32 %v1589_v0, %v674_v12 }
 0xa76   :  { %v1591_v2 = vpop.eup %1590 }
 0xa77   :  { %v657_v3 = vmul.f32 %v1591_v2, %v654_v63  ;;  %vm662_vm13 = vweird.f32 %v1591_v2  ;;  %v679_v20 = vsel %vm678_vm5, %v1589_v0, %v675_v17  ;;  %v1490_v0 = vld [vmem:[%s2337_s12 + $0xf8] sm:$0xff]  ;;  %v2086_v17 = vld [vmem:[%s2338_s14 + $0x4] sm:$0xf] }
 0xa78   :  { %vm663_vm15 = vmor %vm661_vm14, %vm662_vm13  ;;  %v684_v26 = vsel %vm681_vm6, %v683_v25, %v679_v20  ;;  %893 = vmatpush.msrb.mxu2 %v1490_v0  ;;  %v1482_v20 = vld [vmem:[%s2337_s12 + $0xb8] sm:$0xff] }
 0xa79   :  { %v658_v4 = vsub.f32 1.0, %v657_v3 }
 0xa7a   :  { %894 = vmatpush.msrb.mxu2 %v1489_v1 }
 0xa7b   :  { %v659_v8 = vmul.f32 %v1591_v2, %v658_v4  ;;  %v1487_v4 = vld [vmem:[%s2337_s12 + $0xe0] sm:$0xff] }
 0xa7d   :  { %v660_v10 = vadd.f32 %v1591_v2, %v659_v8  ;;  %v1486_v8 = vld [vmem:[%s2337_s12 + $0xd8] sm:$0xff] }
 0xa7f   :  { %v664_v15 = vsel %vm663_vm15, %v1591_v2, %v660_v10  ;;  %v1488_v2 = vld [vmem:[%s2337_s12 + $0xe8] sm:$0xff]  ;;  %v1485_v10 = vld [vmem:[%s2337_s12 + $0xd0] sm:$0xff] }
 0xa80   :  { %v669_v16 = vsel %vm666_vm0, %v668_v13, %v664_v15  ;;  %895 = vmatpush.msrb.mxu2 %v1488_v2  ;;  %v1484_v13 = vld [vmem:[%s2337_s12 + $0xc8] sm:$0xff] }
 0xa81   :  { %1458 = vmatmul.msk.f32.vlgmr.msra.gmra.mxu2 %vm267_vm7, %v669_v16  ;;  %v1483_v16 = vld [vmem:[%s2337_s12 + $0xc0] sm:$0xff] }
 0xa82   :  { %896 = vmatpush.msrb.mxu2 %v1487_v4  ;;  %v1495_v4 = vld [vmem:[%s2357_s25 + $0x58] sm:$0xff] }
 0xa83   :  { %996 = vmatpush.msrb.mxu3 %v1495_v4 }
 0xa84   :  { %897 = vmatpush.msrb.mxu2 %v1486_v8  ;;  %v1492_v8 = vld [vmem:[%s2357_s25 + $0x40] sm:$0xff] }
 0xa86   :  { %898 = vmatpush.msrb.mxu2 %v1485_v10 }
 0xa88   :  { %899 = vmatpush.msrb.mxu2 %v1484_v13 }
 0xa89   :  { %1459 = vmatmul.msk.f32.gmra.mxu2 %vm267_vm7, %v684_v26 }
 0xa8a   :  { %900 = vmatpush.msrb.mxu2 %v1483_v16 }
 0xa8c   :  { %901 = vmatpush.msrb.mxu2 %v1482_v20 }
 0xb04   :  { %v709_v21 = vpop.f32.mrf.mxu2 }
 0xb05   :  { %v721_v28 = vmul.f32 %v716_v27, %v709_v21  ;;  %v824_v27 = vperm.slane %v2086_v17, 0  ;;  %v1481_v21 = vld [vmem:[%s2337_s12 + $0xb0] sm:$0xff] }
 0xb06   :  { %902 = vmatpush.msrb.mxu2 %v1481_v21 }
 0xb07   :  { %725 = vrot.lane.b32.xlu2 %v721_v28, %s1617_s5 }
 0xb0c   :  { %v712_v31 = vpop.f32.mrf.mxu2 }
 0xb0d   :  { %v722_v32 = vmul.f32 %v718_v30, %v712_v31 }
 0xb0f   :  { %727 = vrot.lane.b32.xlu1 %v722_v32, %s1617_s5  ;;  %v827_v32 = vperm.slane %v2086_v17, 1 }
 0xb61   :  { %v726_v33 = vpop.permute.xlu2 %725 }
 0xb62   :  { %v731_v36 = vadd.f32 %v726_v33, %v1992_v45  ;;  %v1480_v33 = vld [vmem:[%s2337_s12 + $0xa8] sm:$0xff] }
 0xb63   :  { %903 = vmatpush.msrb.mxu2 %v1480_v33 }
 0xb64   :  { %745 = vrot.lane.b32.xlu0 %v731_v36, %s1616_s4 }
 0xb65   :  { %904 = vmatpush.msrb.mxu2 %v1479_v38 }
 0xb81   :  { %v728_v41 = vpop.permute.xlu1 %727 }
 0xb82   :  { %v732_v14 = vadd.f32 %v728_v41, %v1988_v44  ;;  %v1478_v41 = vld [vmem:[%s2337_s12 + $0x98] sm:$0xff] }
 0xb83   :  { %905 = vmatpush.msrb.mxu2 %v1478_v41 }
 0xb84   :  { %747 = vrot.lane.b32.xlu2 %v732_v14, %s1616_s4 }
 0xbd6   :  { %v746_v42 = vpop.permute.xlu0 %745 }
 0xbd7   :  { %1465 = vmatmul.msk.f32.vlgmr.msra.gmra.mxu1 %vm144_vm2, %v746_v42 }
 0xbde   :  { %v748_v43 = vpop.permute.xlu2 %747 }
 0xbdf   :  { %1466 = vmatmul.msk.f32.gmra.mxu1 %vm144_vm2, %v748_v43 }
 0xc54   :  { %v770_v23 = vpop.f32.mrf.mxu1 }
 0xc55   :  { %v771_v45 = vadd.f32 %v1556_v22, %v770_v23 }
 0xc57   :  { %v778_v24 = vadd.f32 %v771_v45, %v1975_v35  ;;  %v1477_v45 = vld [vmem:[%s2337_s12 + $0x90] sm:$0xff] }
 0xc58   :  { %906 = vmatpush.msrb.mxu2 %v1477_v45 }
 0xc59   :  { %v780_v29 = vsel %vm144_vm2, %v778_v24, 0.0 }
 0xc5a   :  { %781 = vadd.xlane.f32.xlu1 %v780_v29  ;;  %v1475_v29 = vld [vmem:[%s2337_s12 + $0x80] sm:$0xff] }
 0xc5c   :  { %v773_v44 = vpop.f32.mrf.mxu1 }
 0xc5d   :  { %v774_v46 = vadd.f32 %v1556_v22, %v773_v44  ;;  %v1557_v44 = vld [vmem:[%s2335_s11 + $0x1] ss:$0 sm:$0xff] }
 0xc5f   :  { %v779_v47 = vadd.f32 %v774_v46, %v1979_v40 }
 0xc61   :  { %v783_v48 = vsel %vm144_vm2, %v779_v47, 0.0 }
 0xc62   :  { %784 = vadd.xlane.f32.xlu0 %v783_v48 }
 0xccd   :  { %v782_v49 = vpop.xlane.xlu1 %781 }
 0xcce   :  { %v786_v50 = vmul.f32 %v782_v49, %v1854_v39 }
 0xcd0   :  { %v788_v51 = vsub.f32 %v778_v24, %v786_v50  ;;  %v1476_v24 = vld [vmem:[%s2337_s12 + $0x88] sm:$0xff] }
 0xcd1   :  { %907 = vmatpush.msrb.mxu2 %v1476_v24 }
 0xcd2   :  { %v790_v52 = vmul.f32 %v788_v51, %v788_v51 }
 0xcd3   :  { %908 = vmatpush.msrb.mxu2 %v1475_v29 }
 0xcd4   :  { %v792_v53 = vsel %vm144_vm2, %v790_v52, 0.0  ;;  %v1558_v52 = vld [vmem:[%s2339_s13 + $0x1] ss:$0 sm:$0xff] }
 0xcd5   :  { %v785_v54 = vpop.xlane.xlu0 %784  ;;  %793 = vadd.xlane.f32.xlu2 %v792_v53 }
 0xcd6   :  { %v787_v35 = vmul.f32 %v785_v54, %v1854_v39 }
 0xcd8   :  { %v2038_v55 = vsub.f32 %v779_v47, %v787_v35 }
 0xcda   :  { %v791_v56 = vmul.f32 %v2038_v55, %v2038_v55 }
 0xcdc   :  { %v795_v40 = vsel %vm144_vm2, %v791_v56, 0.0 }
 0xcdd   :  { %796 = vadd.xlane.f32.xlu1 %v795_v40 }
 0xd48   :  { %v794_v61 = vpop.xlane.xlu2 %793 }
 0xd49   :  { %v798_v62 = vmul.f32 %v794_v61, %v1854_v39 }
 0xd4b   :  { %v800_v63 = vadd.f32 1e-05, %v798_v62 }
 0xd4d   :  { %1592 = vrsqrt.f32 %v800_v63  ;;  %vm808_vm8 = vweird.f32 %v800_v63 }
 0xd50   :  { %v797_v3 = vpop.xlane.xlu1 %796 }
 0xd51   :  { %v799_v34 = vmul.f32 %v797_v3, %v1854_v39 }
 0xd53   :  { %v1593_v5 = vpop.eup %1592  ;;  %v801_v6 = vadd.f32 1e-05, %v799_v34 }
 0xd54   :  { %v803_v9 = vmul.f32 %v1593_v5, %v800_v63  ;;  %vm809_vm3 = vweird.f32 %v1593_v5 }
 0xd55   :  { %1594 = vrsqrt.f32 %v801_v6  ;;  %vm810_vm9 = vmor %vm808_vm8, %vm809_vm3  ;;  %vm818_vm11 = vweird.f32 %v801_v6 }
 0xd56   :  { %v804_v12 = vmul.f32 %v1593_v5, %v803_v9 }
 0xd58   :  { %v805_v15 = vmul.f32 0.5, %v804_v12 }
 0xd5a   :  { %v806_v18 = vsub.f32 1.5, %v805_v15 }
 0xd5b   :  { %v1595_v19 = vpop.eup %1594 }
 0xd5c   :  { %v807_v25 = vmul.f32 %v1593_v5, %v806_v18  ;;  %v813_v26 = vmul.f32 %v1595_v19, %v801_v6  ;;  %vm819_vm10 = vweird.f32 %v1595_v19  ;;  %v1493_v6 = vld [vmem:[%s2357_s25 + $0x48] sm:$0xff] }
 0xd5d   :  { %vm820_vm12 = vmor %vm818_vm11, %vm819_vm10 }
 0xd5e   :  { %v811_v28 = vsel %vm810_vm9, %v1593_v5, %v807_v25  ;;  %v814_v30 = vmul.f32 %v1595_v19, %v813_v26  ;;  %v1494_v5 = vld [vmem:[%s2357_s25 + $0x50] sm:$0xff] }
 0xd5f   :  { %v822_v31 = vmul.f32 %v811_v28, %v788_v51  ;;  %997 = vmatpush.msrb.mxu3 %v1494_v5 }
 0xd60   :  { %v815_v36 = vmul.f32 0.5, %v814_v30  ;;  %v962_v30 = vperm.slane %v2086_v17, 2 }
 0xd61   :  { %v825_v37 = vmul.f32 %v824_v27, %v822_v31  ;;  %998 = vmatpush.msrb.mxu3 %v1493_v6 }
 0xd62   :  { %v816_v11 = vsub.f32 1.5, %v815_v36  ;;  %v965_v36 = vperm.slane %v2086_v17, 3  ;;  %v1559_v17 = vld [vmem:[%s2330_s7 + $0x2] ss:$0 sm:$0xff] }
 0xd63   :  { %v828_v7 = vadd.f32 %v827_v32, %v825_v37  ;;  %999 = vmatpush.msrb.mxu3 %v1492_v8 }
 0xd64   :  { %v817_v14 = vmul.f32 %v1595_v19, %v816_v11 }
 0xd65   :  { %1473 = vmatmul.msk.f32.vlgmr.msrb.gmra.mxu0 %vm144_vm2, %v828_v7 }
 0xd66   :  { %v821_v42 = vsel %vm820_vm12, %v1595_v19, %v817_v14 }
 0xd67   :  { %v823_v43 = vmul.f32 %v821_v42, %v2038_v55 }
 0xd69   :  { %v826_v22 = vmul.f32 %v824_v27, %v823_v43 }
 0xd6b   :  { %v829_v23 = vadd.f32 %v827_v32, %v826_v22 }
 0xd6d   :  { %1474 = vmatmul.msk.f32.gmra.mxu0 %vm144_vm2, %v829_v23 }
 0xde2   :  { %v863_v46 = vpop.f32.mrf.mxu0 }
 0xde3   :  { %v864_v47 = vadd.f32 %v1557_v44, %v863_v46 }
 0xde5   :  { %v869_v48 = vmax.f32 %v864_v47, 0.0 }
 0xde7   :  { %909 = vmatmul.f32.vlgmr.msrb.gmra.mxu2 %v869_v48 }
 0xdea   :  { %v866_v49 = vpop.f32.mrf.mxu0 }
 0xdeb   :  { %v867_v50 = vadd.f32 %v1557_v44, %v866_v49 }
 0xded   :  { %v870_v51 = vmax.f32 %v867_v50, 0.0 }
 0xdef   :  { %912 = vmatmul.f32.gmra.mxu2 %v870_v51 }
 0xe6a   :  { %v910_v53 = vpop.f32.mrf.mxu2 }
 0xe6b   :  { %v911_v54 = vadd.f32 %v1558_v52, %v910_v53 }
 0xe6d   :  { %v916_v35 = vadd.f32 %v911_v54, %v828_v7 }
 0xe6f   :  { %v918_v55 = vsel %vm144_vm2, %v916_v35, 0.0 }
 0xe70   :  { %919 = vadd.xlane.f32.xlu0 %v918_v55 }
 0xe72   :  { %v913_v56 = vpop.f32.mrf.mxu2 }
 0xe73   :  { %v914_v40 = vadd.f32 %v1558_v52, %v913_v56 }
 0xe75   :  { %v917_v57 = vadd.f32 %v914_v40, %v829_v23 }
 0xe77   :  { %v921_v58 = vsel %vm144_vm2, %v917_v57, 0.0 }
 0xe78   :  { %922 = vadd.xlane.f32.xlu2 %v921_v58 }
 0xee3   :  { %v920_v59 = vpop.xlane.xlu0 %919 }
 0xee4   :  { %v924_v60 = vmul.f32 %v920_v59, %v1854_v39 }
 0xee6   :  { %v926_v61 = vsub.f32 %v916_v35, %v924_v60 }
 0xee8   :  { %v928_v62 = vmul.f32 %v926_v61, %v926_v61 }
 0xeea   :  { %v930_v63 = vsel %vm144_vm2, %v928_v62, 0.0 }
 0xeeb   :  { %931 = vadd.xlane.f32.xlu1 %v930_v63  ;;  %v923_v0 = vpop.xlane.xlu2 %922 }
 0xeec   :  { %v925_v1 = vmul.f32 %v923_v0, %v1854_v39 }
 0xeee   :  { %v927_v2 = vsub.f32 %v917_v57, %v925_v1 }
 0xef0   :  { %v929_v3 = vmul.f32 %v927_v2, %v927_v2 }
 0xef2   :  { %v933_v34 = vsel %vm144_vm2, %v929_v3, 0.0 }
 0xef3   :  { %934 = vadd.xlane.f32.xlu0 %v933_v34 }
 0xf5e   :  { %v932_v9 = vpop.xlane.xlu1 %931 }
 0xf5f   :  { %v936_v10 = vmul.f32 %v932_v9, %v1854_v39 }
 0xf61   :  { %v938_v12 = vadd.f32 1e-05, %v936_v10 }
 0xf63   :  { %1596 = vrsqrt.f32 %v938_v12  ;;  %vm946_vm14 = vweird.f32 %v938_v12 }
 0xf66   :  { %v935_v13 = vpop.xlane.xlu0 %934 }
 0xf67   :  { %v937_v15 = vmul.f32 %v935_v13, %v1854_v39 }
 0xf69   :  { %v1597_v16 = vpop.eup %1596  ;;  %v939_v18 = vadd.f32 1e-05, %v937_v15 }
 0xf6a   :  { %v941_v19 = vmul.f32 %v1597_v16, %v938_v12  ;;  %vm947_vm13 = vweird.f32 %v1597_v16 }
 0xf6b   :  { %1598 = vrsqrt.f32 %v939_v18  ;;  %vm948_vm15 = vmor %vm946_vm14, %vm947_vm13  ;;  %vm956_vm1 = vweird.f32 %v939_v18 }
 0xf6c   :  { %v942_v20 = vmul.f32 %v1597_v16, %v941_v19 }
 0xf6e   :  { %v943_v25 = vmul.f32 0.5, %v942_v20 }
 0xf70   :  { %v944_v26 = vsub.f32 1.5, %v943_v25 }
 0xf71   :  { %v1599_v27 = vpop.eup %1598 }
 0xf72   :  { %v945_v21 = vmul.f32 %v1597_v16, %v944_v26  ;;  %v951_v28 = vmul.f32 %v1599_v27, %v939_v18  ;;  %vm957_vm0 = vweird.f32 %v1599_v27 }
 0xf73   :  { %vm958_vm4 = vmor %vm956_vm1, %vm957_vm0 }
 0xf74   :  { %v949_v31 = vsel %vm948_vm15, %v1597_v16, %v945_v21  ;;  %v952_v32 = vmul.f32 %v1599_v27, %v951_v28 }
 0xf75   :  { %v960_v33 = vmul.f32 %v949_v31, %v926_v61 }
 0xf76   :  { %v953_v37 = vmul.f32 0.5, %v952_v32 }
 0xf77   :  { %v963_v38 = vmul.f32 %v962_v30, %v960_v33 }
 0xf78   :  { %v954_v11 = vsub.f32 1.5, %v953_v37 }
 0xf79   :  { %v2145_v7 = vadd.f32 %v965_v36, %v963_v38  ;;  %v1507_v38 = vld [vmem:[%s2334_s8 + $0x58] sm:$0xff] }
 0xf7a   :  { %v955_v41 = vmul.f32 %v1599_v27, %v954_v11  ;;  %v1506_v11 = vld [vmem:[%s2334_s8 + $0x50] sm:$0xff]  ;;  %1179 = vmatpush.msra.mxu3 %v1507_v38 }
 0xf7b   :  { %1497 = vmatmul.msk.f32.vlgmr.msrb.gmra.mxu3 %vm144_vm2, %v2145_v7 }
 0xf7c   :  { %v959_v14 = vsel %vm958_vm4, %v1599_v27, %v955_v41  ;;  %v1505_v41 = vld [vmem:[%s2334_s8 + $0x48] sm:$0xff]  ;;  %1180 = vmatpush.msra.mxu3 %v1506_v11 }
 0xf7d   :  { %v961_v42 = vmul.f32 %v959_v14, %v927_v2  ;;  %v1504_v14 = vld [vmem:[%s2334_s8 + $0x40] sm:$0xff] }
 0xf7e   :  { %1181 = vmatpush.msra.mxu3 %v1505_v41  ;;  %v1522_v41 = vld [vmem:[%s2337_s12 + $0x118] sm:$0xff] }
 0xf7f   :  { %v964_v43 = vmul.f32 %v962_v30, %v961_v42 }
 0xf80   :  { %1182 = vmatpush.msra.mxu3 %v1504_v14 }
 0xf81   :  { %v2149_v22 = vadd.f32 %v965_v36, %v964_v43 }
 0xf83   :  { %1498 = vmatmul.msk.f32.gmra.mxu3 %vm144_vm2, %v2149_v22 }
 0xffe   :  { %v1001_v23 = vpop.f32.mrf.mxu3 }
 0xfff   :  { %v1002_v45 = vadd.f32 %v1559_v17, %v1001_v23 }
0x1001   :  { %1009 = vrot.lane.b32.xlu1 %v1002_v45, %s1616_s4 }
0x1006   :  { %v1004_v24 = vpop.f32.mrf.mxu3 }
0x1007   :  { %v1005_v29 = vadd.f32 %v1559_v17, %v1004_v24  ;;  %v1560_v17 = vld [vmem:[%s2333_s9 + $0x2] ss:$0 sm:$0xff] }
0x1009   :  { %1011 = vrot.lane.b32.xlu2 %v1005_v29, %s1616_s4 }
0x1063   :  { %v2158_v44 = vpop.permute.xlu2 %1011 }
0x1064   :  { %1015 = vrot.lane.b32.xlu0 %v2158_v44, %s1617_s5 }
0x1073   :  { %v2162_v46 = vpop.permute.xlu1 %1009 }
0x1074   :  { %1017 = vrot.lane.b32.xlu2 %v2162_v46, %s1617_s5 }
0x10ce   :  { %v1018_v47 = vpop.permute.xlu2 %1017 }
0x10cf   :  { %v1022_v48 = vsub.f32 %v1005_v29, %v1018_v47 }
0x10d1   :  { %1027 = vrot.lane.b32.xlu1 %v1022_v48, %s1616_s4 }
0x10d6   :  { %v1016_v49 = vpop.permute.xlu0 %1015 }
0x10d7   :  { %v1021_v50 = vsub.f32 %v1002_v45, %v1016_v49 }
0x10d9   :  { %1129 = vrot.lane.b32.xlu2 %v1021_v50, %s1618_s6  ;;  %1025 = vrot.lane.b32.xlu0 %v1021_v50, %s1616_s4 }
0x10e1   :  { %1131 = vrot.lane.b32.xlu0 %v1022_v48, %s1618_s6 }
0x1133   :  { %v1130_v26 = vpop.permute.xlu2 %1129 }
0x1143   :  { %v1028_v53 = vpop.permute.xlu1 %1027 }
0x1144   :  { %v1032_v54 = vmul.f32 %v1028_v53, %v1005_v29 }
0x114b   :  { %v1026_v51 = vpop.permute.xlu0 %1025 }
0x114c   :  { %v1031_v52 = vmul.f32 %v1026_v51, %v1002_v45 }
0x114e   :  { %1499 = vmatmul.msk.f32.vlgmr.msrb.gmra.mxu1 %vm144_vm2, %v1031_v52 }
0x1153   :  { %v1132_v28 = vpop.permute.xlu0 %1131 }
0x1156   :  { %1500 = vmatmul.msk.f32.gmra.mxu1 %vm144_vm2, %v1032_v54 }
0x11cb   :  { %v1056_v35 = vpop.f32.mrf.mxu1 }
0x11cc   :  { %v1062_v55 = vsub.f32 0.0, %v1056_v35 }
0x11ce   :  { %v1064_v56 = vmul.f32 1.442695, %v1062_v55 }
0x11d0   :  { %1600 = vpow2.f32 %v1064_v56  ;;  %v1515_v56 = vld [vmem:[%s2336_s10 + $0x58] sm:$0xff] }
0x11d1   :  { %1272 = vmatpush.msra.mxu1 %v1515_v56 }
0x11d3   :  { %v1059_v40 = vpop.f32.mrf.mxu1 }
0x11d4   :  { %v1063_v57 = vsub.f32 0.0, %v1059_v40  ;;  %v1514_v40 = vld [vmem:[%s2336_s10 + $0x50] sm:$0xff] }
0x11d5   :  { %1273 = vmatpush.msra.mxu1 %v1514_v40 }
0x11d6   :  { %v1601_v58 = vpop.eup %1600  ;;  %v1066_v59 = vmul.f32 1.442695, %v1063_v57  ;;  %v1513_v57 = vld [vmem:[%s2336_s10 + $0x48] sm:$0xff] }
0x11d7   :  { %v1068_v60 = vadd.f32 1.0, %v1601_v58  ;;  %1274 = vmatpush.msra.mxu1 %v1513_v57  ;;  %v1512_v58 = vld [vmem:[%s2336_s10 + $0x40] sm:$0xff] }
0x11d8   :  { %1602 = vpow2.f32 %v1066_v59 }
0x11d9   :  { %1604 = vrcp.f32 %v1068_v60  ;;  %v1081_v2 = vand.u32 2147483648, %v1068_v60  ;;  %v1079_v34 = vand.u32 2147483647, %v1068_v60  ;;  %vm1075_vm6 = vweird.f32 %v1068_v60  ;;  %1275 = vmatpush.msra.mxu1 %v1512_v58 }
0x11db   :  { %v1082_v6 = vor.u32 1.1754944e-38, %v1081_v2  ;;  %vm1080_vm8 = vcmp.eq.f32.partialorder %v1079_v34, 8.507059e+37 }
0x11de   :  { %v1603_v61 = vpop.eup %1602 }
0x11df   :  { %v1605_v62 = vpop.eup %1604  ;;  %v1069_v63 = vadd.f32 1.0, %v1603_v61 }
0x11e0   :  { %v1071_v0 = vmul.f32 %v1605_v62, %v1068_v60  ;;  %vm1076_vm5 = vweird.f32 %v1605_v62 }
0x11e1   :  { %1606 = vrcp.f32 %v1069_v63  ;;  %vm1077_vm3 = vmor %vm1075_vm6, %vm1076_vm5  ;;  %v1096_v13 = vand.u32 2147483648, %v1069_v63  ;;  %v1094_v16 = vand.u32 2147483647, %v1069_v63  ;;  %vm1090_vm10 = vweird.f32 %v1069_v63 }
0x11e2   :  { %v1072_v1 = vsub.f32 1.0, %v1071_v0  ;;  %v1532_v0 = vld [vmem:[%s2337_s12 + $0x168] sm:$0xff] }
0x11e3   :  { %v1097_v19 = vor.u32 1.1754944e-38, %v1096_v13  ;;  %vm1095_vm12 = vcmp.eq.f32.partialorder %v1094_v16, 8.507059e+37  ;;  %v1527_v13 = vld [vmem:[%s2337_s12 + $0x140] sm:$0xff] }
0x11e4   :  { %v1073_v3 = vmul.f32 %v1605_v62, %v1072_v1 }
0x11e6   :  { %v1074_v4 = vadd.f32 %v1605_v62, %v1073_v3  ;;  %v1531_v3 = vld [vmem:[%s2337_s12 + $0x160] sm:$0xff] }
0x11e7   :  { %v1607_v5 = vpop.eup %1606 }
0x11e8   :  { %v1078_v8 = vsel %vm1077_vm3, %v1605_v62, %v1074_v4  ;;  %v1086_v9 = vmul.f32 %v1607_v5, %v1069_v63  ;;  %vm1091_vm9 = vweird.f32 %v1607_v5  ;;  %v1534_v62 = vld [vmem:[%s2337_s12 + $0x178] sm:$0xff]  ;;  %v1533_v63 = vld [vmem:[%s2337_s12 + $0x170] sm:$0xff] }
0x11e9   :  { %v1083_v10 = vsel %vm1080_vm8, %v1082_v6, %v1078_v8  ;;  %vm1092_vm11 = vmor %vm1090_vm10, %vm1091_vm9  ;;  %1307 = vmatpush.msrb.mxu0 %v1534_v62  ;;  %v1529_v8 = vld [vmem:[%s2337_s12 + $0x150] sm:$0xff]  ;;  %vm1429_vm10 = vcmask 7168  }
0x11ea   :  { %1502 = vmatmul.msk.f32.vlgmr.msra.gmra.mxu0 %vm267_vm7, %v1083_v10  ;;  %v1087_v12 = vsub.f32 1.0, %v1086_v9  ;;  %v1528_v10 = vld [vmem:[%s2337_s12 + $0x148] sm:$0xff] }
0x11eb   :  { %1308 = vmatpush.msrb.mxu0 %v1533_v63 }
0x11ec   :  { %v1088_v15 = vmul.f32 %v1607_v5, %v1087_v12 }
0x11ed   :  { %1309 = vmatpush.msrb.mxu0 %v1532_v0 }
0x11ee   :  { %v1089_v18 = vadd.f32 %v1607_v5, %v1088_v15  ;;  %v2250_v15 = vld [vmem:[%s2338_s14 + $0x8] sm:$0xf] }
0x11ef   :  { %1310 = vmatpush.msrb.mxu0 %v1531_v3 }
0x11f0   :  { %v1093_v20 = vsel %vm1092_vm11, %v1607_v5, %v1089_v18  ;;  %v1530_v5 = vld [vmem:[%s2337_s12 + $0x158] sm:$0xff] }
0x11f1   :  { %v1098_v25 = vsel %vm1095_vm12, %v1097_v19, %v1093_v20  ;;  %1311 = vmatpush.msrb.mxu0 %v1530_v5  ;;  %v1526_v19 = vld [vmem:[%s2337_s12 + $0x138] sm:$0xff] }
0x11f2   :  { %1503 = vmatmul.msk.f32.gmra.mxu0 %vm267_vm7, %v1098_v25 }
0x11f3   :  { %1312 = vmatpush.msrb.mxu0 %v1529_v8  ;;  %v1385_v8 = vld [vmem:[%s2341_s15 + $0x8] sm:$0xff] }
0x11f5   :  { %1313 = vmatpush.msrb.mxu0 %v1528_v10 }
0x11f7   :  { %1314 = vmatpush.msrb.mxu0 %v1527_v13 }
0x11f9   :  { %1315 = vmatpush.msrb.mxu0 %v1526_v19 }
0x1267   :  { %v1123_v27 = vpop.f32.mrf.mxu0 }
0x1268   :  { %v1135_v21 = vmul.f32 %v1130_v26, %v1123_v27  ;;  %v1238_v26 = vperm.slane %v2250_v15, 0  ;;  %v1525_v27 = vld [vmem:[%s2337_s12 + $0x130] sm:$0xff] }
0x1269   :  { %1316 = vmatpush.msrb.mxu0 %v1525_v27 }
0x126a   :  { %1139 = vrot.lane.b32.xlu1 %v1135_v21, %s1617_s5 }
0x126f   :  { %v1126_v30 = vpop.f32.mrf.mxu0 }
0x1270   :  { %v1136_v31 = vmul.f32 %v1132_v28, %v1126_v30 }
0x1272   :  { %1141 = vrot.lane.b32.xlu2 %v1136_v31, %s1617_s5  ;;  %v1241_v31 = vperm.slane %v2250_v15, 1 }
0x12cc   :  { %v1142_v32 = vpop.permute.xlu2 %1141 }
0x12cd   :  { %v1146_v33 = vadd.f32 %v1142_v32, %v2162_v46  ;;  %v1524_v32 = vld [vmem:[%s2337_s12 + $0x128] sm:$0xff] }
0x12ce   :  { %1317 = vmatpush.msrb.mxu0 %v1524_v32 }
0x12cf   :  { %1161 = vrot.lane.b32.xlu1 %v1146_v33, %s1616_s4 }
0x12dc   :  { %v1140_v36 = vpop.permute.xlu1 %1139 }
0x12dd   :  { %v1145_v37 = vadd.f32 %v1140_v36, %v2158_v44 }
0x12df   :  { %1159 = vrot.lane.b32.xlu0 %v1145_v37, %s1616_s4  ;;  %v1523_v37 = vld [vmem:[%s2337_s12 + $0x120] sm:$0xff] }
0x12e0   :  { %1318 = vmatpush.msrb.mxu0 %v1523_v37 }
0x12e2   :  { %1319 = vmatpush.msrb.mxu0 %v1522_v41 }
0x1341   :  { %v1162_v43 = vpop.permute.xlu1 %1161 }
0x1351   :  { %v1160_v42 = vpop.permute.xlu0 %1159 }
0x1352   :  { %1509 = vmatmul.msk.f32.vlgmr.msra.gmra.mxu3 %vm144_vm2, %v1160_v42 }
0x135a   :  { %1510 = vmatmul.msk.f32.gmra.mxu3 %vm144_vm2, %v1162_v43 }
0x13d5   :  { %v1184_v23 = vpop.f32.mrf.mxu3 }
0x13d6   :  { %v1185_v45 = vadd.f32 %v1560_v17, %v1184_v23 }
0x13d8   :  { %v1192_v24 = vadd.f32 %v1185_v45, %v2145_v7  ;;  %v1521_v45 = vld [vmem:[%s2337_s12 + $0x110] sm:$0xff] }
0x13d9   :  { %1320 = vmatpush.msrb.mxu0 %v1521_v45  ;;  %v26_v45 = vstv %s2343_s18 }
0x13da   :  { %v1194_v29 = vsel %vm144_vm2, %v1192_v24, 0.0  ;;  %27 = vst [vmem:[#allocation2] sm:$0x1] %v26_v45 }
0x13db   :  { %1195 = vadd.xlane.f32.xlu2 %v1194_v29  ;;  %v1519_v29 = vld [vmem:[%s2337_s12 + $0x100] sm:$0xff] }
0x13dd   :  { %v1187_v44 = vpop.f32.mrf.mxu3 }
0x13de   :  { %v1188_v46 = vadd.f32 %v1560_v17, %v1187_v44  ;;  %v1561_v44 = vld [vmem:[%s2335_s11 + $0x2] ss:$0 sm:$0xff] }
0x13e0   :  { %v1193_v47 = vadd.f32 %v1188_v46, %v2149_v22 }
0x13e2   :  { %v1197_v48 = vsel %vm144_vm2, %v1193_v47, 0.0 }
0x13e3   :  { %1198 = vadd.xlane.f32.xlu0 %v1197_v48 }
0x144e   :  { %v1196_v49 = vpop.xlane.xlu2 %1195 }
0x144f   :  { %v1200_v50 = vmul.f32 %v1196_v49, %v1854_v39 }
0x1451   :  { %v1202_v51 = vsub.f32 %v1192_v24, %v1200_v50  ;;  %v1520_v24 = vld [vmem:[%s2337_s12 + $0x108] sm:$0xff] }
0x1452   :  { %1321 = vmatpush.msrb.mxu0 %v1520_v24  ;;  %v1563_v24 = vld [vmem:[%s2340_s16] ss:$0 sm:$0xff] }
0x1453   :  { %v1204_v52 = vmul.f32 %v1202_v51, %v1202_v51 }
0x1454   :  { %1322 = vmatpush.msrb.mxu0 %v1519_v29 }
0x1455   :  { %v1206_v53 = vsel %vm144_vm2, %v1204_v52, 0.0  ;;  %v1562_v52 = vld [vmem:[%s2339_s13 + $0x2] ss:$0 sm:$0xff] }
0x1456   :  { %v1199_v54 = vpop.xlane.xlu0 %1198  ;;  %1207 = vadd.xlane.f32.xlu1 %v1206_v53 }
0x1457   :  { %v1201_v7 = vmul.f32 %v1199_v54, %v1854_v39 }
0x1459   :  { %v2204_v35 = vsub.f32 %v1193_v47, %v1201_v7 }
0x145b   :  { %v1205_v55 = vmul.f32 %v2204_v35, %v2204_v35 }
0x145d   :  { %v1209_v22 = vsel %vm144_vm2, %v1205_v55, 0.0 }
0x145e   :  { %1210 = vadd.xlane.f32.xlu2 %v1209_v22 }
0x14c9   :  { %v1208_v59 = vpop.xlane.xlu1 %1207 }
0x14ca   :  { %v1212_v60 = vmul.f32 %v1208_v59, %v1854_v39 }
0x14cc   :  { %v1214_v61 = vadd.f32 1e-05, %v1212_v60 }
0x14ce   :  { %1608 = vrsqrt.f32 %v1214_v61  ;;  %vm1222_vm13 = vweird.f32 %v1214_v61 }
0x14d1   :  { %v1211_v1 = vpop.xlane.xlu2 %1210 }
0x14d2   :  { %v1213_v2 = vmul.f32 %v1211_v1, %v1854_v39 }
0x14d4   :  { %v1609_v34 = vpop.eup %1608  ;;  %v1215_v4 = vadd.f32 1e-05, %v1213_v2 }
0x14d5   :  { %v1217_v6 = vmul.f32 %v1609_v34, %v1214_v61  ;;  %vm1223_vm7 = vweird.f32 %v1609_v34 }
0x14d6   :  { %1610 = vrsqrt.f32 %v1215_v4  ;;  %vm1224_vm14 = vmor %vm1222_vm13, %vm1223_vm7  ;;  %vm1232_vm0 = vweird.f32 %v1215_v4 }
0x14d7   :  { %v1218_v9 = vmul.f32 %v1609_v34, %v1217_v6  ;;  %v1386_v6 = vld [vmem:[%s2341_s15 + $0x10] sm:$0xff] }
0x14d9   :  { %v1219_v12 = vmul.f32 0.5, %v1218_v9  ;;  %v1384_v9 = vld [vmem:[%s2341_s15] sm:$0xff] }
0x14db   :  { %v1220_v16 = vsub.f32 1.5, %v1219_v12 }
0x14dc   :  { %v1611_v18 = vpop.eup %1610 }
0x14dd   :  { %v1221_v20 = vmul.f32 %v1609_v34, %v1220_v16  ;;  %v1227_v25 = vmul.f32 %v1611_v18, %v1215_v4  ;;  %vm1233_vm15 = vweird.f32 %v1611_v18  ;;  %v1387_v4 = vld [vmem:[%s2341_s15 + $0x18] sm:$0xff] }
0x14de   :  { %vm1234_vm1 = vmor %vm1232_vm0, %vm1233_vm15  ;;  %1407 = vmatpush.msra.mxu2 %v1387_v4 }
0x14df   :  { %v1225_v21 = vsel %vm1224_vm14, %v1609_v34, %v1221_v20  ;;  %v1228_v28 = vmul.f32 %v1611_v18, %v1227_v25 }
0x14e0   :  { %v1236_v30 = vmul.f32 %v1225_v21, %v1202_v51  ;;  %1408 = vmatpush.msra.mxu2 %v1386_v6 }
0x14e1   :  { %v1229_v33 = vmul.f32 0.5, %v1228_v28 }
0x14e2   :  { %v1239_v36 = vmul.f32 %v1238_v26, %v1236_v30  ;;  %1409 = vmatpush.msra.mxu2 %v1385_v8 }
0x14e3   :  { %v1230_v38 = vsub.f32 1.5, %v1229_v33 }
0x14e4   :  { %v1242_v11 = vadd.f32 %v1241_v31, %v1239_v36  ;;  %1410 = vmatpush.msra.mxu2 %v1384_v9 }
0x14e5   :  { %v1231_v14 = vmul.f32 %v1611_v18, %v1230_v38  ;;  %v1379_v38 = vperm.slane %v2250_v15, 3 }
0x14e6   :  { %1517 = vmatmul.msk.f32.vlgmr.msra.gmra.mxu1 %vm144_vm2, %v1242_v11 }
0x14e7   :  { %v1235_v42 = vsel %vm1234_vm1, %v1611_v18, %v1231_v14 }
0x14e8   :  { %v1237_v43 = vmul.f32 %v1235_v42, %v2204_v35 }
0x14ea   :  { %v1240_v17 = vmul.f32 %v1238_v26, %v1237_v43 }
0x14ec   :  { %v1243_v23 = vadd.f32 %v1241_v31, %v1240_v17 }
0x14ee   :  { %1518 = vmatmul.msk.f32.gmra.mxu1 %vm144_vm2, %v1243_v23 }
0x1563   :  { %v1277_v46 = vpop.f32.mrf.mxu1 }
0x1564   :  { %v1278_v47 = vadd.f32 %v1561_v44, %v1277_v46 }
0x1566   :  { %v1283_v48 = vmax.f32 %v1278_v47, 0.0 }
0x1568   :  { %1323 = vmatmul.f32.vlgmr.msrb.gmra.mxu0 %v1283_v48 }
0x156b   :  { %v1280_v49 = vpop.f32.mrf.mxu1 }
0x156c   :  { %v1281_v50 = vadd.f32 %v1561_v44, %v1280_v49  ;;  %v1564_v44 = vld [vmem:[%s2342_s17] ss:$0 sm:$0xff] }
0x156d   :  { %v1565_v49 = vld [vmem:[#allocation2] ss:$0 sm:$0xff] }
0x156e   :  { %v1284_v51 = vmax.f32 %v1281_v50, 0.0 }
0x1570   :  { %1326 = vmatmul.f32.gmra.mxu0 %v1284_v51 }
0x15e5   :  { %v1324_v53 = vpop.f32.mrf.mxu0 }
0x15e6   :  { %v1325_v54 = vadd.f32 %v1562_v52, %v1324_v53 }
0x15e8   :  { %v1330_v7 = vadd.f32 %v1325_v54, %v1242_v11 }
0x15ea   :  { %v1332_v35 = vsel %vm144_vm2, %v1330_v7, 0.0 }
0x15eb   :  { %1333 = vadd.xlane.f32.xlu0 %v1332_v35 }
0x15ed   :  { %v1327_v55 = vpop.f32.mrf.mxu0 }
0x15ee   :  { %v1328_v22 = vadd.f32 %v1562_v52, %v1327_v55 }
0x15f0   :  { %v1331_v56 = vadd.f32 %v1328_v22, %v1243_v23 }
0x15f2   :  { %v1335_v40 = vsel %vm144_vm2, %v1331_v56, 0.0 }
0x15f3   :  { %1336 = vadd.xlane.f32.xlu1 %v1335_v40 }
0x165e   :  { %v1334_v57 = vpop.xlane.xlu0 %1333 }
0x165f   :  { %v1338_v58 = vmul.f32 %v1334_v57, %v1854_v39 }
0x1661   :  { %v1340_v59 = vsub.f32 %v1330_v7, %v1338_v58 }
0x1663   :  { %v1342_v60 = vmul.f32 %v1340_v59, %v1340_v59 }
0x1665   :  { %v1344_v61 = vsel %vm144_vm2, %v1342_v60, 0.0 }
0x1666   :  { %1345 = vadd.xlane.f32.xlu2 %v1344_v61  ;;  %v1337_v62 = vpop.xlane.xlu1 %1336 }
0x1667   :  { %v1339_v63 = vmul.f32 %v1337_v62, %v1854_v39 }
0x1669   :  { %v1341_v0 = vsub.f32 %v1331_v56, %v1339_v63 }
0x166b   :  { %v1343_v1 = vmul.f32 %v1341_v0, %v1341_v0 }
0x166d   :  { %v1347_v2 = vsel %vm144_vm2, %v1343_v1, 0.0 }
0x166e   :  { %1348 = vadd.xlane.f32.xlu0 %v1347_v2 }
0x16d9   :  { %v1346_v3 = vpop.xlane.xlu2 %1345 }
0x16da   :  { %v1350_v34 = vmul.f32 %v1346_v3, %v1854_v39 }
0x16dc   :  { %v1352_v5 = vadd.f32 1e-05, %v1350_v34 }
0x16de   :  { %1612 = vrsqrt.f32 %v1352_v5  ;;  %vm1360_vm5 = vweird.f32 %v1352_v5 }
0x16e1   :  { %v1349_v10 = vpop.xlane.xlu0 %1348 }
0x16e2   :  { %v1351_v12 = vmul.f32 %v1349_v10, %v1854_v39  ;;  %v1376_v39 = vperm.slane %v2250_v15, 2 }
0x16e4   :  { %v1613_v13 = vpop.eup %1612  ;;  %v1353_v16 = vadd.f32 1e-05, %v1351_v12 }
0x16e5   :  { %v1355_v18 = vmul.f32 %v1613_v13, %v1352_v5  ;;  %vm1361_vm4 = vweird.f32 %v1613_v13 }
0x16e6   :  { %1614 = vrsqrt.f32 %v1353_v16  ;;  %vm1362_vm6 = vmor %vm1360_vm5, %vm1361_vm4  ;;  %vm1370_vm8 = vweird.f32 %v1353_v16 }
0x16e7   :  { %v1356_v19 = vmul.f32 %v1613_v13, %v1355_v18 }
0x16e9   :  { %v1357_v20 = vmul.f32 0.5, %v1356_v19 }
0x16eb   :  { %v1358_v25 = vsub.f32 1.5, %v1357_v20 }
0x16ec   :  { %v1615_v26 = vpop.eup %1614 }
0x16ed   :  { %v1359_v27 = vmul.f32 %v1613_v13, %v1358_v25  ;;  %v1365_v21 = vmul.f32 %v1615_v26, %v1353_v16  ;;  %vm1371_vm3 = vweird.f32 %v1615_v26 }
0x16ee   :  { %vm1372_vm9 = vmor %vm1370_vm8, %vm1371_vm3 }
0x16ef   :  { %v1366_v28 = vmul.f32 %v1615_v26, %v1365_v21  ;;  %v1363_v30 = vsel %vm1362_vm6, %v1613_v13, %v1359_v27 }
0x16f0   :  { %v1374_v33 = vmul.f32 %v1363_v30, %v1340_v59 }
0x16f1   :  { %v1367_v31 = vmul.f32 0.5, %v1366_v28 }
0x16f2   :  { %v1377_v11 = vmul.f32 %v1376_v39, %v1374_v33 }
0x16f3   :  { %v1368_v32 = vsub.f32 1.5, %v1367_v31 }
0x16f4   :  { %v1380_v42 = vadd.f32 %v1379_v38, %v1377_v11 }
0x16f5   :  { %v1369_v36 = vmul.f32 %v1615_v26, %v1368_v32 }
0x16f7   :  { %v1373_v37 = vsel %vm1372_vm9, %v1615_v26, %v1369_v36 }
0x16f8   :  { %v1375_v41 = vmul.f32 %v1373_v37, %v1341_v0 }
0x16fa   :  { %v1378_v14 = vmul.f32 %v1376_v39, %v1375_v41 }
0x16fc   :  { %v1381_v43 = vadd.f32 %v1379_v38, %v1378_v14 }
0x16fe   :  { %v1382_v17 = vadd.f32 %v1381_v43, %v1380_v42 }
0x1700   :  { %v1383_v23 = vmul.f32 0.5, %v1382_v17 }
0x1702   :  { %1536 = vmatmul.msk.f32.vlgmr.msra.gmra.mxu2 %vm144_vm2, %v1383_v23 }
0x1785   :  { %v1412_v29 = vpop.f32.mrf.mxu2 }
0x1786   :  { %v1413_v15 = vadd.f32 %v1563_v24, %v1412_v29 }
0x1788   :  { %v1415_v46 = vmax.f32 %v1413_v15, 0.0 }
0x178a   :  { %v1420_v47 = vmul.f32 %v1564_v44, %v1415_v46 }
0x178c   :  { %v1421_v48 = vsel %vm144_vm2, %v1420_v47, 0.0 }
0x178d   :  { %1422 = vadd.xlane.f32.xlu1 %v1421_v48 }
0x1800   :  { %v1423_v50 = vpop.xlane.xlu1 %1422 }
0x1801   :  { %v1428_v51 = vadd.f32 %v1565_v49, %v1423_v50 }
0x1803   :  { %1430 = vst.msk [vmem:[%s2344_s21] sm:$0xff] %vm1429_vm10, %v1428_v51 }

</bundles_post_ra>
